<compile_context>
chip_gen: v5e
topology: v5e:2x2
jax: 0.10.0
libtpu: 0.0.40
codegen_flags: <defaults>
</compile_context>

<pallas_src>
import functools

import jax
import jax.numpy as jnp
from jax.experimental import pallas as pl
from jax.experimental.pallas import tpu as pltpu


# --------------------------- fused RNN forward kernel ---------------------------

def _fused_rnn_kernel(x_ref, *refs, n_layers, seq_len, batch, hidden):
    """Fused n_layers-LSTM + Linear + Sigmoid forward.

    refs = [w_ih_0, w_hh_0, b_0, ..., w_ih_{L-1}, w_hh_{L-1}, b_{L-1},
            w_head, b_head, out_ref, hseq_scr, gates_scr]

    w_ih_l: (in_dim_l, 4H) bf16   (transposed, gate order [i, f, o, g])
    w_hh_l: (H, 4H)       bf16
    b_l:    (1, 4H)       f32     (b_ih + b_hh folded)
    w_head: (H, I)        bf16
    b_head: (1, I)        f32
    """
    layer_w = refs[:3 * n_layers]
    wh_ref = refs[3 * n_layers]
    bh_ref = refs[3 * n_layers + 1]
    out_ref = refs[3 * n_layers + 2]
    hseq_scr = refs[3 * n_layers + 3]      # (T*B, H)  f32 — layer activations
    gates_scr = refs[3 * n_layers + 4]     # (T*B, 4H) f32 — hoisted input gates

    T, B, H = seq_len, batch, hidden

    for layer in range(n_layers):
        w_ih = layer_w[3 * layer][...]        # (in_dim, 4H) bf16
        w_hh = layer_w[3 * layer + 1][...]    # (H, 4H)      bf16
        bias = layer_w[3 * layer + 2][...]    # (1, 4H)      f32

        if layer == 0:
            inp = x_ref[...]                               # (T*B, I) bf16
        else:
            inp = hseq_scr[...].astype(jnp.bfloat16)       # (T*B, H) bf16

        # Hoisted input projection for ALL timesteps: one MXU matmul, M = T*B.
        # Bias is folded here so the recurrent step is h @ W_hh + elementwise only.
        gates_scr[...] = (
            jnp.dot(inp, w_ih, preferred_element_type=jnp.float32) + bias)

        # Recurrence (inherently sequential). h/c are tiny f32 values kept in
        # registers; the time loop is fully unrolled (static T).
        h = jnp.zeros((B, H), jnp.float32)
        c = jnp.zeros((B, H), jnp.float32)
        for t in range(T):
            rows = pl.ds(t * B, B)                         # static slice
            gates = gates_scr[rows, :]                     # (B, 4H) f32
            if t > 0:   # h == 0 at t == 0, skip the zero matmul
                gates = gates + jnp.dot(h.astype(jnp.bfloat16), w_hh,
                                        preferred_element_type=jnp.float32)

            # Gate order is [i, f, o, g]: one sigmoid over the contiguous 3H
            # block, one tanh over the last H block (all f32 — v5e-safe).
            sig = jax.nn.sigmoid(gates[:, :3 * H])
            i_g = sig[:, 0 * H:1 * H]
            f_g = sig[:, 1 * H:2 * H]
            o_g = sig[:, 2 * H:3 * H]
            g_g = jnp.tanh(gates[:, 3 * H:])

            c = f_g * c + i_g * g_g
            h = o_g * jnp.tanh(c)
            hseq_scr[rows, :] = h                          # stays in VMEM

    # Head: Linear + Sigmoid over the whole sequence, still VMEM-resident.
    logits = (jnp.dot(hseq_scr[...].astype(jnp.bfloat16), wh_ref[...],
                      preferred_element_type=jnp.float32) + bh_ref[...])
    out_ref[...] = jax.nn.sigmoid(logits).astype(out_ref.dtype)


# ------------------------------ parameter prep ----------------------------------

def _reorder_gates(w):
    """PyTorch gate-row order [i, f, g, o] -> [i, f, o, g] (rows = 4H axis)."""
    i, f, g, o = jnp.split(w, 4, axis=0)
    return jnp.concatenate([i, f, o, g], axis=0)


def prepare_params(params):
    """One-time layout/dtype prep (do NOT call per forward):

    - transpose weights to (in, 4H) / (H, 4H) / (H, I)
    - reorder gate blocks [i, f, g, o] -> [i, f, o, g]
    - fold b_ih + b_hh into a single (1, 4H) bias
    - cast matmul operands (weights) to bf16; biases stay f32.
    """
    layers = []
    for p in params["lstm"]:
        H = p["w_hh"].shape[1]
        w_ih = jnp.transpose(_reorder_gates(p["w_ih"])).astype(jnp.bfloat16)
        w_hh = jnp.transpose(_reorder_gates(p["w_hh"])).astype(jnp.bfloat16)
        b = _reorder_gates((p["b_ih"] + p["b_hh"]).reshape(4 * H, 1))
        b = b.reshape(1, 4 * H).astype(jnp.float32)
        layers.append((w_ih, w_hh, b))
    w_head = jnp.transpose(params["head"]["w"]).astype(jnp.bfloat16)   # (H, I)
    b_head = params["head"]["b"].reshape(1, -1).astype(jnp.float32)    # (1, I)
    return {"layers": layers, "head": (w_head, b_head)}


# ------------------------------- forward wrapper --------------------------------

@jax.jit
def rnn_forward(x, prepped):
    """Forward of the PyTorch `RNN` module: sigmoid(Linear(LSTM(x)))."""
    T, B, I = x.shape
    H = prepped["layers"][0][1].shape[0]          # w_hh is (H, 4H)
    n_layers = len(prepped["layers"])
    w_head, b_head = prepped["head"]
    out_dim = w_head.shape[1]

    x2d = x.reshape(T * B, I).astype(jnp.bfloat16)

    flat_w = []
    in_specs = [pl.BlockSpec((T * B, I), lambda: (0, 0))]
    for (w_ih, w_hh, b) in prepped["layers"]:
        flat_w += [w_ih, w_hh, b]
        in_specs += [pl.BlockSpec(w_ih.shape, lambda: (0, 0)),
                     pl.BlockSpec(w_hh.shape, lambda: (0, 0)),
                     pl.BlockSpec(b.shape, lambda: (0, 0))]
    flat_w += [w_head, b_head]
    in_specs += [pl.BlockSpec(w_head.shape, lambda: (0, 0)),
                 pl.BlockSpec(b_head.shape, lambda: (0, 0))]

    kernel = functools.partial(_fused_rnn_kernel, n_layers=n_layers,
                               seq_len=T, batch=B, hidden=H)

    out2d = pl.pallas_call(
        kernel,
        out_shape=jax.ShapeDtypeStruct((T * B, out_dim), jnp.float32),
        in_specs=in_specs,
        out_specs=pl.BlockSpec((T * B, out_dim), lambda: (0, 0)),
        scratch_shapes=[
            pltpu.VMEM((T * B, H), jnp.float32),        # layer activations
            pltpu.VMEM((T * B, 4 * H), jnp.float32),    # hoisted gate inputs
        ],
    )(x2d, *flat_w)

    return out2d.reshape(T, B, out_dim)


# ------------------------------ parameter init -----------------------------------

def init_rnn_params(key, input_size, hidden_size, n_layers):
    """Deterministic init mimicking PyTorch LSTM/Linear (U(-1/sqrt(H), 1/sqrt(H)))."""
    params = {"lstm": [], "head": None}
    bound = 1.0 / jnp.sqrt(jnp.float32(hidden_size))
    for layer in range(n_layers):
        in_dim = input_size if layer == 0 else hidden_size
        key, k1, k2, k3, k4 = jax.random.split(key, 5)
        params["lstm"].append(dict(
            w_ih=jax.random.uniform(k1, (4 * hidden_size, in_dim),
                                    jnp.float32, -bound, bound),
            w_hh=jax.random.uniform(k2, (4 * hidden_size, hidden_size),
                                    jnp.float32, -bound, bound),
            b_ih=jax.random.uniform(k3, (4 * hidden_size,),
                                    jnp.float32, -bound, bound),
            b_hh=jax.random.uniform(k4, (4 * hidden_size,),
                                    jnp.float32, -bound, bound),
        ))
    key, k1, k2 = jax.random.split(key, 3)
    params["head"] = dict(
        w=jax.random.uniform(k1, (input_size, hidden_size),
                             jnp.float32, -bound, bound),
        b=jax.random.uniform(k2, (input_size,), jnp.float32, -bound, bound),
    )
    return params


# ----------------------------- pure-JAX reference --------------------------------

def _rnn_forward_ref(x, params):
    """f32 reference with PyTorch LSTM semantics (gate order [i, f, g, o])."""
    h_seq = x
    for p in params["lstm"]:
        T, B, _ = h_seq.shape
        H = p["w_hh"].shape[1]

        def step(carry, x_t):
            h, c = carry
            gates = (x_t @ p["w_ih"].T + p["b_ih"]
                     + h @ p["w_hh"].T + p["b_hh"])
            i, f, g, o = jnp.split(gates, 4, axis=-1)
            i, f, o = jax.nn.sigmoid(i), jax.nn.sigmoid(f), jax.nn.sigmoid(o)
            g = jnp.tanh(g)
            c = f * c + i * g
            h = o * jnp.tanh(c)
            return (h, c), h

        init = (jnp.zeros((B, H), jnp.float32), jnp.zeros((B, H), jnp.float32))
        _, h_seq = jax.lax.scan(step, init, h_seq)
    y = h_seq @ params["head"]["w"].T + params["head"]["b"]
    return jax.nn.sigmoid(y)


# ----------------------------------- main -----------------------------------------

if __name__ == "__main__":
    INPUT_SIZE = 16
    HIDDEN_SIZE = 32
    N_LAYERS = 2
    SEQ_LEN = 8
    BATCH = 2

    key = jax.random.PRNGKey(0)
    key_x, key_p = jax.random.split(key)
    x = jax.random.normal(key_x, (SEQ_LEN, BATCH, INPUT_SIZE), jnp.float32)
    params = init_rnn_params(key_p, INPUT_SIZE, HIDDEN_SIZE, N_LAYERS)

    prepped = prepare_params(params)          # one-time layout / dtype prep

    out = rnn_forward(x, prepped)
    out = jax.block_until_ready(out)

    ref = _rnn_forward_ref(x, params)
    assert out.shape == (SEQ_LEN, BATCH, INPUT_SIZE)
    max_err = float(jnp.max(jnp.abs(out - ref)))
    # bf16 MXU operands vs f32 reference -> loosened tolerance (outputs in [0, 1]).
    assert max_err < 3e-2, f"mismatch vs reference: max abs err {max_err}"

    print("KERNEL_OK")
</pallas_src>

<mosaic_0001>
module attributes {stable_mosaic.version = 11 : i64} {
  func.func @_fused_rnn_kernel(%arg0: memref<16x16xbf16, #tpu.memory_space<vmem>>, %arg1: memref<16x128xbf16, #tpu.memory_space<vmem>>, %arg2: memref<32x128xbf16, #tpu.memory_space<vmem>>, %arg3: memref<1x128xf32, #tpu.memory_space<vmem>>, %arg4: memref<32x128xbf16, #tpu.memory_space<vmem>>, %arg5: memref<32x128xbf16, #tpu.memory_space<vmem>>, %arg6: memref<1x128xf32, #tpu.memory_space<vmem>>, %arg7: memref<32x16xbf16, #tpu.memory_space<vmem>>, %arg8: memref<1x16xf32, #tpu.memory_space<vmem>>, %arg9: memref<16x16xf32, #tpu.memory_space<vmem>>, %arg10: memref<16x32xf32, #tpu.memory_space<vmem>>, %arg11: memref<16x128xf32, #tpu.memory_space<vmem>>) attributes {dimension_semantics = [], scalar_prefetch = 0 : i64, scratch_operands = 2 : i64, tpu.core_type = #tpu.core_type<tc>} {
    %c0 = arith.constant 0 : index
    %c0_0 = arith.constant 0 : index
    %0 = vector.load %arg1[%c0, %c0_0] : memref<16x128xbf16, #tpu.memory_space<vmem>>, vector<16x128xbf16>
    %c0_1 = arith.constant 0 : index
    %c0_2 = arith.constant 0 : index
    %1 = vector.load %arg2[%c0_1, %c0_2] : memref<32x128xbf16, #tpu.memory_space<vmem>>, vector<32x128xbf16>
    %c0_3 = arith.constant 0 : index
    %c0_4 = arith.constant 0 : index
    %2 = vector.load %arg3[%c0_3, %c0_4] : memref<1x128xf32, #tpu.memory_space<vmem>>, vector<1x128xf32>
    %c0_5 = arith.constant 0 : index
    %c0_6 = arith.constant 0 : index
    %3 = vector.load %arg0[%c0_5, %c0_6] : memref<16x16xbf16, #tpu.memory_space<vmem>>, vector<16x16xbf16>
    %cst = arith.constant dense<0.000000e+00> : vector<16x128xf32>
    %4 = tpu.matmul %3, %0, %cst {dimension_numbers = #tpu.dot_dimension_numbers<[1], [0], [0], [1], [0, 0, 1, 1], [], []>} : vector<16x16xbf16>, vector<16x128xbf16>, vector<16x128xf32> -> vector<16x128xf32>
    %5 = vector.broadcast %2 : vector<1x128xf32> to vector<16x128xf32>
    %6 = arith.addf %4, %5 : vector<16x128xf32>
    %c0_7 = arith.constant 0 : index
    %c0_8 = arith.constant 0 : index
    %7 = vector.load %arg11[%c0_7, %c0_8] : memref<16x128xf32, #tpu.memory_space<vmem>>, vector<16x128xf32>
    tpu.vector_store %arg11[%c0_7, %c0_8], %6 {strides = array<i32>} : memref<16x128xf32, #tpu.memory_space<vmem>>, vector<16x128xf32>,
    %cst_9 = arith.constant 0.000000e+00 : f32
    %8 = vector.broadcast %cst_9 : f32 to vector<2x32xf32>
    %c0_10 = arith.constant 0 : index
    %c0_11 = arith.constant 0 : index
    %9 = vector.load %arg11[%c0_10, %c0_11] : memref<16x128xf32, #tpu.memory_space<vmem>>, vector<2x128xf32>
    %10 = vector.extract_strided_slice %9 {offsets = [0, 0], sizes = [2, 96], strides = [1, 1]} : vector<2x128xf32> to vector<2x96xf32>
    %11 = arith.negf %10 : vector<2x96xf32>
    %12 = math.exp %11 : vector<2x96xf32>
    %cst_12 = arith.constant 1.000000e+00 : f32
    %13 = vector.broadcast %cst_12 : f32 to vector<2x96xf32>
    %14 = arith.addf %13, %12 : vector<2x96xf32>
    %15 = arith.divf %13, %14 : vector<2x96xf32>
    %16 = vector.extract_strided_slice %15 {offsets = [0, 0], sizes = [2, 32], strides = [1, 1]} : vector<2x96xf32> to vector<2x32xf32>
    %17 = vector.extract_strided_slice %15 {offsets = [0, 32], sizes = [2, 32], strides = [1, 1]} : vector<2x96xf32> to vector<2x32xf32>
    %18 = vector.extract_strided_slice %15 {offsets = [0, 64], sizes = [2, 32], strides = [1, 1]} : vector<2x96xf32> to vector<2x32xf32>
    %19 = vector.extract_strided_slice %9 {offsets = [0, 96], sizes = [2, 32], strides = [1, 1]} : vector<2x128xf32> to vector<2x32xf32>
    %20 = math.tanh %19 : vector<2x32xf32>
    %21 = arith.mulf %17, %8 : vector<2x32xf32>
    %22 = arith.mulf %16, %20 : vector<2x32xf32>
    %23 = arith.addf %21, %22 : vector<2x32xf32>
    %24 = math.tanh %23 : vector<2x32xf32>
    %25 = arith.mulf %18, %24 : vector<2x32xf32>
    %c0_13 = arith.constant 0 : index
    %c0_14 = arith.constant 0 : index
    %26 = vector.load %arg10[%c0_13, %c0_14] : memref<16x32xf32, #tpu.memory_space<vmem>>, vector<2x32xf32>
    tpu.vector_store %arg10[%c0_13, %c0_14], %25 {strides = array<i32>} : memref<16x32xf32, #tpu.memory_space<vmem>>, vector<2x32xf32>,
    %c2 = arith.constant 2 : index
    %c0_15 = arith.constant 0 : index
    %27 = vector.load %arg11[%c2, %c0_15] : memref<16x128xf32, #tpu.memory_space<vmem>>, vector<2x128xf32>
    %28 = arith.truncf %25 : vector<2x32xf32> to vector<2x32xbf16>
    %cst_16 = arith.constant dense<0.000000e+00> : vector<2x128xf32>
    %29 = tpu.matmul %28, %1, %cst_16 {dimension_numbers = #tpu.dot_dimension_numbers<[1], [0], [0], [1], [0, 0, 1, 1], [], []>} : vector<2x32xbf16>, vector<32x128xbf16>, vector<2x128xf32> -> vector<2x128xf32>
    %30 = arith.addf %27, %29 : vector<2x128xf32>
    %31 = vector.extract_strided_slice %30 {offsets = [0, 0], sizes = [2, 96], strides = [1, 1]} : vector<2x128xf32> to vector<2x96xf32>
    %32 = arith.negf %31 : vector<2x96xf32>
    %33 = math.exp %32 : vector<2x96xf32>
    %cst_17 = arith.constant 1.000000e+00 : f32
    %34 = vector.broadcast %cst_17 : f32 to vector<2x96xf32>
    %35 = arith.addf %34, %33 : vector<2x96xf32>
    %36 = arith.divf %34, %35 : vector<2x96xf32>
    %37 = vector.extract_strided_slice %36 {offsets = [0, 0], sizes = [2, 32], strides = [1, 1]} : vector<2x96xf32> to vector<2x32xf32>
    %38 = vector.extract_strided_slice %36 {offsets = [0, 32], sizes = [2, 32], strides = [1, 1]} : vector<2x96xf32> to vector<2x32xf32>
    %39 = vector.extract_strided_slice %36 {offsets = [0, 64], sizes = [2, 32], strides = [1, 1]} : vector<2x96xf32> to vector<2x32xf32>
    %40 = vector.extract_strided_slice %30 {offsets = [0, 96], sizes = [2, 32], strides = [1, 1]} : vector<2x128xf32> to vector<2x32xf32>
    %41 = math.tanh %40 : vector<2x32xf32>
    %42 = arith.mulf %38, %23 : vector<2x32xf32>
    %43 = arith.mulf %37, %41 : vector<2x32xf32>
    %44 = arith.addf %42, %43 : vector<2x32xf32>
    %45 = math.tanh %44 : vector<2x32xf32>
    %46 = arith.mulf %39, %45 : vector<2x32xf32>
    %c2_18 = arith.constant 2 : index
    %c0_19 = arith.constant 0 : index
    %47 = vector.load %arg10[%c2_18, %c0_19] : memref<16x32xf32, #tpu.memory_space<vmem>>, vector<2x32xf32>
    tpu.vector_store %arg10[%c2_18, %c0_19], %46 {strides = array<i32>} : memref<16x32xf32, #tpu.memory_space<vmem>>, vector<2x32xf32>,
    %c4 = arith.constant 4 : index
    %c0_20 = arith.constant 0 : index
    %48 = vector.load %arg11[%c4, %c0_20] : memref<16x128xf32, #tpu.memory_space<vmem>>, vector<2x128xf32>
    %49 = arith.truncf %46 : vector<2x32xf32> to vector<2x32xbf16>
    %cst_21 = arith.constant dense<0.000000e+00> : vector<2x128xf32>
    %50 = tpu.matmul %49, %1, %cst_21 {dimension_numbers = #tpu.dot_dimension_numbers<[1], [0], [0], [1], [0, 0, 1, 1], [], []>} : vector<2x32xbf16>, vector<32x128xbf16>, vector<2x128xf32> -> vector<2x128xf32>
    %51 = arith.addf %48, %50 : vector<2x128xf32>
    %52 = vector.extract_strided_slice %51 {offsets = [0, 0], sizes = [2, 96], strides = [1, 1]} : vector<2x128xf32> to vector<2x96xf32>
    %53 = arith.negf %52 : vector<2x96xf32>
    %54 = math.exp %53 : vector<2x96xf32>
    %cst_22 = arith.constant 1.000000e+00 : f32
    %55 = vector.broadcast %cst_22 : f32 to vector<2x96xf32>
    %56 = arith.addf %55, %54 : vector<2x96xf32>
    %57 = arith.divf %55, %56 : vector<2x96xf32>
    %58 = vector.extract_strided_slice %57 {offsets = [0, 0], sizes = [2, 32], strides = [1, 1]} : vector<2x96xf32> to vector<2x32xf32>
    %59 = vector.extract_strided_slice %57 {offsets = [0, 32], sizes = [2, 32], strides = [1, 1]} : vector<2x96xf32> to vector<2x32xf32>
    %60 = vector.extract_strided_slice %57 {offsets = [0, 64], sizes = [2, 32], strides = [1, 1]} : vector<2x96xf32> to vector<2x32xf32>
    %61 = vector.extract_strided_slice %51 {offsets = [0, 96], sizes = [2, 32], strides = [1, 1]} : vector<2x128xf32> to vector<2x32xf32>
    %62 = math.tanh %61 : vector<2x32xf32>
    %63 = arith.mulf %59, %44 : vector<2x32xf32>
    %64 = arith.mulf %58, %62 : vector<2x32xf32>
    %65 = arith.addf %63, %64 : vector<2x32xf32>
    %66 = math.tanh %65 : vector<2x32xf32>
    %67 = arith.mulf %60, %66 : vector<2x32xf32>
    %c4_23 = arith.constant 4 : index
    %c0_24 = arith.constant 0 : index
    %68 = vector.load %arg10[%c4_23, %c0_24] : memref<16x32xf32, #tpu.memory_space<vmem>>, vector<2x32xf32>
    tpu.vector_store %arg10[%c4_23, %c0_24], %67 {strides = array<i32>} : memref<16x32xf32, #tpu.memory_space<vmem>>, vector<2x32xf32>,
    %c6 = arith.constant 6 : index
    %c0_25 = arith.constant 0 : index
    %69 = vector.load %arg11[%c6, %c0_25] : memref<16x128xf32, #tpu.memory_space<vmem>>, vector<2x128xf32>
    %70 = arith.truncf %67 : vector<2x32xf32> to vector<2x32xbf16>
    %cst_26 = arith.constant dense<0.000000e+00> : vector<2x128xf32>
    %71 = tpu.matmul %70, %1, %cst_26 {dimension_numbers = #tpu.dot_dimension_numbers<[1], [0], [0], [1], [0, 0, 1, 1], [], []>} : vector<2x32xbf16>, vector<32x128xbf16>, vector<2x128xf32> -> vector<2x128xf32>
    %72 = arith.addf %69, %71 : vector<2x128xf32>
    %73 = vector.extract_strided_slice %72 {offsets = [0, 0], sizes = [2, 96], strides = [1, 1]} : vector<2x128xf32> to vector<2x96xf32>
    %74 = arith.negf %73 : vector<2x96xf32>
    %75 = math.exp %74 : vector<2x96xf32>
    %cst_27 = arith.constant 1.000000e+00 : f32
    %76 = vector.broadcast %cst_27 : f32 to vector<2x96xf32>
    %77 = arith.addf %76, %75 : vector<2x96xf32>
    %78 = arith.divf %76, %77 : vector<2x96xf32>
    %79 = vector.extract_strided_slice %78 {offsets = [0, 0], sizes = [2, 32], strides = [1, 1]} : vector<2x96xf32> to vector<2x32xf32>
    %80 = vector.extract_strided_slice %78 {offsets = [0, 32], sizes = [2, 32], strides = [1, 1]} : vector<2x96xf32> to vector<2x32xf32>
    %81 = vector.extract_strided_slice %78 {offsets = [0, 64], sizes = [2, 32], strides = [1, 1]} : vector<2x96xf32> to vector<2x32xf32>
    %82 = vector.extract_strided_slice %72 {offsets = [0, 96], sizes = [2, 32], strides = [1, 1]} : vector<2x128xf32> to vector<2x32xf32>
    %83 = math.tanh %82 : vector<2x32xf32>
    %84 = arith.mulf %80, %65 : vector<2x32xf32>
    %85 = arith.mulf %79, %83 : vector<2x32xf32>
    %86 = arith.addf %84, %85 : vector<2x32xf32>
    %87 = math.tanh %86 : vector<2x32xf32>
    %88 = arith.mulf %81, %87 : vector<2x32xf32>
    %c6_28 = arith.constant 6 : index
    %c0_29 = arith.constant 0 : index
    %89 = vector.load %arg10[%c6_28, %c0_29] : memref<16x32xf32, #tpu.memory_space<vmem>>, vector<2x32xf32>
    tpu.vector_store %arg10[%c6_28, %c0_29], %88 {strides = array<i32>} : memref<16x32xf32, #tpu.memory_space<vmem>>, vector<2x32xf32>,
    %c8 = arith.constant 8 : index
    %c0_30 = arith.constant 0 : index
    %90 = vector.load %arg11[%c8, %c0_30] : memref<16x128xf32, #tpu.memory_space<vmem>>, vector<2x128xf32>
    %91 = arith.truncf %88 : vector<2x32xf32> to vector<2x32xbf16>
    %cst_31 = arith.constant dense<0.000000e+00> : vector<2x128xf32>
    %92 = tpu.matmul %91, %1, %cst_31 {dimension_numbers = #tpu.dot_dimension_numbers<[1], [0], [0], [1], [0, 0, 1, 1], [], []>} : vector<2x32xbf16>, vector<32x128xbf16>, vector<2x128xf32> -> vector<2x128xf32>
    %93 = arith.addf %90, %92 : vector<2x128xf32>
    %94 = vector.extract_strided_slice %93 {offsets = [0, 0], sizes = [2, 96], strides = [1, 1]} : vector<2x128xf32> to vector<2x96xf32>
    %95 = arith.negf %94 : vector<2x96xf32>
    %96 = math.exp %95 : vector<2x96xf32>
    %cst_32 = arith.constant 1.000000e+00 : f32
    %97 = vector.broadcast %cst_32 : f32 to vector<2x96xf32>
    %98 = arith.addf %97, %96 : vector<2x96xf32>
    %99 = arith.divf %97, %98 : vector<2x96xf32>
    %100 = vector.extract_strided_slice %99 {offsets = [0, 0], sizes = [2, 32], strides = [1, 1]} : vector<2x96xf32> to vector<2x32xf32>
    %101 = vector.extract_strided_slice %99 {offsets = [0, 32], sizes = [2, 32], strides = [1, 1]} : vector<2x96xf32> to vector<2x32xf32>
    %102 = vector.extract_strided_slice %99 {offsets = [0, 64], sizes = [2, 32], strides = [1, 1]} : vector<2x96xf32> to vector<2x32xf32>
    %103 = vector.extract_strided_slice %93 {offsets = [0, 96], sizes = [2, 32], strides = [1, 1]} : vector<2x128xf32> to vector<2x32xf32>
    %104 = math.tanh %103 : vector<2x32xf32>
    %105 = arith.mulf %101, %86 : vector<2x32xf32>
    %106 = arith.mulf %100, %104 : vector<2x32xf32>
    %107 = arith.addf %105, %106 : vector<2x32xf32>
    %108 = math.tanh %107 : vector<2x32xf32>
    %109 = arith.mulf %102, %108 : vector<2x32xf32>
    %c8_33 = arith.constant 8 : index
    %c0_34 = arith.constant 0 : index
    %110 = vector.load %arg10[%c8_33, %c0_34] : memref<16x32xf32, #tpu.memory_space<vmem>>, vector<2x32xf32>
    tpu.vector_store %arg10[%c8_33, %c0_34], %109 {strides = array<i32>} : memref<16x32xf32, #tpu.memory_space<vmem>>, vector<2x32xf32>,
    %c10 = arith.constant 10 : index
    %c0_35 = arith.constant 0 : index
    %111 = vector.load %arg11[%c10, %c0_35] : memref<16x128xf32, #tpu.memory_space<vmem>>, vector<2x128xf32>
    %112 = arith.truncf %109 : vector<2x32xf32> to vector<2x32xbf16>
    %cst_36 = arith.constant dense<0.000000e+00> : vector<2x128xf32>
    %113 = tpu.matmul %112, %1, %cst_36 {dimension_numbers = #tpu.dot_dimension_numbers<[1], [0], [0], [1], [0, 0, 1, 1], [], []>} : vector<2x32xbf16>, vector<32x128xbf16>, vector<2x128xf32> -> vector<2x128xf32>
    %114 = arith.addf %111, %113 : vector<2x128xf32>
    %115 = vector.extract_strided_slice %114 {offsets = [0, 0], sizes = [2, 96], strides = [1, 1]} : vector<2x128xf32> to vector<2x96xf32>
    %116 = arith.negf %115 : vector<2x96xf32>
    %117 = math.exp %116 : vector<2x96xf32>
    %cst_37 = arith.constant 1.000000e+00 : f32
    %118 = vector.broadcast %cst_37 : f32 to vector<2x96xf32>
    %119 = arith.addf %118, %117 : vector<2x96xf32>
    %120 = arith.divf %118, %119 : vector<2x96xf32>
    %121 = vector.extract_strided_slice %120 {offsets = [0, 0], sizes = [2, 32], strides = [1, 1]} : vector<2x96xf32> to vector<2x32xf32>
    %122 = vector.extract_strided_slice %120 {offsets = [0, 32], sizes = [2, 32], strides = [1, 1]} : vector<2x96xf32> to vector<2x32xf32>
    %123 = vector.extract_strided_slice %120 {offsets = [0, 64], sizes = [2, 32], strides = [1, 1]} : vector<2x96xf32> to vector<2x32xf32>
    %124 = vector.extract_strided_slice %114 {offsets = [0, 96], sizes = [2, 32], strides = [1, 1]} : vector<2x128xf32> to vector<2x32xf32>
    %125 = math.tanh %124 : vector<2x32xf32>
    %126 = arith.mulf %122, %107 : vector<2x32xf32>
    %127 = arith.mulf %121, %125 : vector<2x32xf32>
    %128 = arith.addf %126, %127 : vector<2x32xf32>
    %129 = math.tanh %128 : vector<2x32xf32>
    %130 = arith.mulf %123, %129 : vector<2x32xf32>
    %c10_38 = arith.constant 10 : index
    %c0_39 = arith.constant 0 : index
    %131 = vector.load %arg10[%c10_38, %c0_39] : memref<16x32xf32, #tpu.memory_space<vmem>>, vector<2x32xf32>
    tpu.vector_store %arg10[%c10_38, %c0_39], %130 {strides = array<i32>} : memref<16x32xf32, #tpu.memory_space<vmem>>, vector<2x32xf32>,
    %c12 = arith.constant 12 : index
    %c0_40 = arith.constant 0 : index
    %132 = vector.load %arg11[%c12, %c0_40] : memref<16x128xf32, #tpu.memory_space<vmem>>, vector<2x128xf32>
    %133 = arith.truncf %130 : vector<2x32xf32> to vector<2x32xbf16>
    %cst_41 = arith.constant dense<0.000000e+00> : vector<2x128xf32>
    %134 = tpu.matmul %133, %1, %cst_41 {dimension_numbers = #tpu.dot_dimension_numbers<[1], [0], [0], [1], [0, 0, 1, 1], [], []>} : vector<2x32xbf16>, vector<32x128xbf16>, vector<2x128xf32> -> vector<2x128xf32>
    %135 = arith.addf %132, %134 : vector<2x128xf32>
    %136 = vector.extract_strided_slice %135 {offsets = [0, 0], sizes = [2, 96], strides = [1, 1]} : vector<2x128xf32> to vector<2x96xf32>
    %137 = arith.negf %136 : vector<2x96xf32>
    %138 = math.exp %137 : vector<2x96xf32>
    %cst_42 = arith.constant 1.000000e+00 : f32
    %139 = vector.broadcast %cst_42 : f32 to vector<2x96xf32>
    %140 = arith.addf %139, %138 : vector<2x96xf32>
    %141 = arith.divf %139, %140 : vector<2x96xf32>
    %142 = vector.extract_strided_slice %141 {offsets = [0, 0], sizes = [2, 32], strides = [1, 1]} : vector<2x96xf32> to vector<2x32xf32>
    %143 = vector.extract_strided_slice %141 {offsets = [0, 32], sizes = [2, 32], strides = [1, 1]} : vector<2x96xf32> to vector<2x32xf32>
    %144 = vector.extract_strided_slice %141 {offsets = [0, 64], sizes = [2, 32], strides = [1, 1]} : vector<2x96xf32> to vector<2x32xf32>
    %145 = vector.extract_strided_slice %135 {offsets = [0, 96], sizes = [2, 32], strides = [1, 1]} : vector<2x128xf32> to vector<2x32xf32>
    %146 = math.tanh %145 : vector<2x32xf32>
    %147 = arith.mulf %143, %128 : vector<2x32xf32>
    %148 = arith.mulf %142, %146 : vector<2x32xf32>
    %149 = arith.addf %147, %148 : vector<2x32xf32>
    %150 = math.tanh %149 : vector<2x32xf32>
    %151 = arith.mulf %144, %150 : vector<2x32xf32>
    %c12_43 = arith.constant 12 : index
    %c0_44 = arith.constant 0 : index
    %152 = vector.load %arg10[%c12_43, %c0_44] : memref<16x32xf32, #tpu.memory_space<vmem>>, vector<2x32xf32>
    tpu.vector_store %arg10[%c12_43, %c0_44], %151 {strides = array<i32>} : memref<16x32xf32, #tpu.memory_space<vmem>>, vector<2x32xf32>,
    %c14 = arith.constant 14 : index
    %c0_45 = arith.constant 0 : index
    %153 = vector.load %arg11[%c14, %c0_45] : memref<16x128xf32, #tpu.memory_space<vmem>>, vector<2x128xf32>
    %154 = arith.truncf %151 : vector<2x32xf32> to vector<2x32xbf16>
    %cst_46 = arith.constant dense<0.000000e+00> : vector<2x128xf32>
    %155 = tpu.matmul %154, %1, %cst_46 {dimension_numbers = #tpu.dot_dimension_numbers<[1], [0], [0], [1], [0, 0, 1, 1], [], []>} : vector<2x32xbf16>, vector<32x128xbf16>, vector<2x128xf32> -> vector<2x128xf32>
    %156 = arith.addf %153, %155 : vector<2x128xf32>
    %157 = vector.extract_strided_slice %156 {offsets = [0, 0], sizes = [2, 96], strides = [1, 1]} : vector<2x128xf32> to vector<2x96xf32>
    %158 = arith.negf %157 : vector<2x96xf32>
    %159 = math.exp %158 : vector<2x96xf32>
    %cst_47 = arith.constant 1.000000e+00 : f32
    %160 = vector.broadcast %cst_47 : f32 to vector<2x96xf32>
    %161 = arith.addf %160, %159 : vector<2x96xf32>
    %162 = arith.divf %160, %161 : vector<2x96xf32>
    %163 = vector.extract_strided_slice %162 {offsets = [0, 0], sizes = [2, 32], strides = [1, 1]} : vector<2x96xf32> to vector<2x32xf32>
    %164 = vector.extract_strided_slice %162 {offsets = [0, 32], sizes = [2, 32], strides = [1, 1]} : vector<2x96xf32> to vector<2x32xf32>
    %165 = vector.extract_strided_slice %162 {offsets = [0, 64], sizes = [2, 32], strides = [1, 1]} : vector<2x96xf32> to vector<2x32xf32>
    %166 = vector.extract_strided_slice %156 {offsets = [0, 96], sizes = [2, 32], strides = [1, 1]} : vector<2x128xf32> to vector<2x32xf32>
    %167 = math.tanh %166 : vector<2x32xf32>
    %168 = arith.mulf %164, %149 : vector<2x32xf32>
    %169 = arith.mulf %163, %167 : vector<2x32xf32>
    %170 = arith.addf %168, %169 : vector<2x32xf32>
    %171 = math.tanh %170 : vector<2x32xf32>
    %172 = arith.mulf %165, %171 : vector<2x32xf32>
    %c14_48 = arith.constant 14 : index
    %c0_49 = arith.constant 0 : index
    %173 = vector.load %arg10[%c14_48, %c0_49] : memref<16x32xf32, #tpu.memory_space<vmem>>, vector<2x32xf32>
    tpu.vector_store %arg10[%c14_48, %c0_49], %172 {strides = array<i32>} : memref<16x32xf32, #tpu.memory_space<vmem>>, vector<2x32xf32>,
    %c0_50 = arith.constant 0 : index
    %c0_51 = arith.constant 0 : index
    %174 = vector.load %arg4[%c0_50, %c0_51] : memref<32x128xbf16, #tpu.memory_space<vmem>>, vector<32x128xbf16>
    %c0_52 = arith.constant 0 : index
    %c0_53 = arith.constant 0 : index
    %175 = vector.load %arg5[%c0_52, %c0_53] : memref<32x128xbf16, #tpu.memory_space<vmem>>, vector<32x128xbf16>
    %c0_54 = arith.constant 0 : index
    %c0_55 = arith.constant 0 : index
    %176 = vector.load %arg6[%c0_54, %c0_55] : memref<1x128xf32, #tpu.memory_space<vmem>>, vector<1x128xf32>
    %c0_56 = arith.constant 0 : index
    %c0_57 = arith.constant 0 : index
    %177 = vector.load %arg10[%c0_56, %c0_57] : memref<16x32xf32, #tpu.memory_space<vmem>>, vector<16x32xf32>
    %178 = arith.truncf %177 : vector<16x32xf32> to vector<16x32xbf16>
    %cst_58 = arith.constant dense<0.000000e+00> : vector<16x128xf32>
    %179 = tpu.matmul %178, %174, %cst_58 {dimension_numbers = #tpu.dot_dimension_numbers<[1], [0], [0], [1], [0, 0, 1, 1], [], []>} : vector<16x32xbf16>, vector<32x128xbf16>, vector<16x128xf32> -> vector<16x128xf32>
    %180 = vector.broadcast %176 : vector<1x128xf32> to vector<16x128xf32>
    %181 = arith.addf %179, %180 : vector<16x128xf32>
    %c0_59 = arith.constant 0 : index
    %c0_60 = arith.constant 0 : index
    %182 = vector.load %arg11[%c0_59, %c0_60] : memref<16x128xf32, #tpu.memory_space<vmem>>, vector<16x128xf32>
    tpu.vector_store %arg11[%c0_59, %c0_60], %181 {strides = array<i32>} : memref<16x128xf32, #tpu.memory_space<vmem>>, vector<16x128xf32>,
    %cst_61 = arith.constant 0.000000e+00 : f32
    %183 = vector.broadcast %cst_61 : f32 to vector<2x32xf32>
    %c0_62 = arith.constant 0 : index
    %c0_63 = arith.constant 0 : index
    %184 = vector.load %arg11[%c0_62, %c0_63] : memref<16x128xf32, #tpu.memory_space<vmem>>, vector<2x128xf32>
    %185 = vector.extract_strided_slice %184 {offsets = [0, 0], sizes = [2, 96], strides = [1, 1]} : vector<2x128xf32> to vector<2x96xf32>
    %186 = arith.negf %185 : vector<2x96xf32>
    %187 = math.exp %186 : vector<2x96xf32>
    %cst_64 = arith.constant 1.000000e+00 : f32
    %188 = vector.broadcast %cst_64 : f32 to vector<2x96xf32>
    %189 = arith.addf %188, %187 : vector<2x96xf32>
    %190 = arith.divf %188, %189 : vector<2x96xf32>
    %191 = vector.extract_strided_slice %190 {offsets = [0, 0], sizes = [2, 32], strides = [1, 1]} : vector<2x96xf32> to vector<2x32xf32>
    %192 = vector.extract_strided_slice %190 {offsets = [0, 32], sizes = [2, 32], strides = [1, 1]} : vector<2x96xf32> to vector<2x32xf32>
    %193 = vector.extract_strided_slice %190 {offsets = [0, 64], sizes = [2, 32], strides = [1, 1]} : vector<2x96xf32> to vector<2x32xf32>
    %194 = vector.extract_strided_slice %184 {offsets = [0, 96], sizes = [2, 32], strides = [1, 1]} : vector<2x128xf32> to vector<2x32xf32>
    %195 = math.tanh %194 : vector<2x32xf32>
    %196 = arith.mulf %192, %183 : vector<2x32xf32>
    %197 = arith.mulf %191, %195 : vector<2x32xf32>
    %198 = arith.addf %196, %197 : vector<2x32xf32>
    %199 = math.tanh %198 : vector<2x32xf32>
    %200 = arith.mulf %193, %199 : vector<2x32xf32>
    %c0_65 = arith.constant 0 : index
    %c0_66 = arith.constant 0 : index
    %201 = vector.load %arg10[%c0_65, %c0_66] : memref<16x32xf32, #tpu.memory_space<vmem>>, vector<2x32xf32>
    tpu.vector_store %arg10[%c0_65, %c0_66], %200 {strides = array<i32>} : memref<16x32xf32, #tpu.memory_space<vmem>>, vector<2x32xf32>,
    %c2_67 = arith.constant 2 : index
    %c0_68 = arith.constant 0 : index
    %202 = vector.load %arg11[%c2_67, %c0_68] : memref<16x128xf32, #tpu.memory_space<vmem>>, vector<2x128xf32>
    %203 = arith.truncf %200 : vector<2x32xf32> to vector<2x32xbf16>
    %cst_69 = arith.constant dense<0.000000e+00> : vector<2x128xf32>
    %204 = tpu.matmul %203, %175, %cst_69 {dimension_numbers = #tpu.dot_dimension_numbers<[1], [0], [0], [1], [0, 0, 1, 1], [], []>} : vector<2x32xbf16>, vector<32x128xbf16>, vector<2x128xf32> -> vector<2x128xf32>
    %205 = arith.addf %202, %204 : vector<2x128xf32>
    %206 = vector.extract_strided_slice %205 {offsets = [0, 0], sizes = [2, 96], strides = [1, 1]} : vector<2x128xf32> to vector<2x96xf32>
    %207 = arith.negf %206 : vector<2x96xf32>
    %208 = math.exp %207 : vector<2x96xf32>
    %cst_70 = arith.constant 1.000000e+00 : f32
    %209 = vector.broadcast %cst_70 : f32 to vector<2x96xf32>
    %210 = arith.addf %209, %208 : vector<2x96xf32>
    %211 = arith.divf %209, %210 : vector<2x96xf32>
    %212 = vector.extract_strided_slice %211 {offsets = [0, 0], sizes = [2, 32], strides = [1, 1]} : vector<2x96xf32> to vector<2x32xf32>
    %213 = vector.extract_strided_slice %211 {offsets = [0, 32], sizes = [2, 32], strides = [1, 1]} : vector<2x96xf32> to vector<2x32xf32>
    %214 = vector.extract_strided_slice %211 {offsets = [0, 64], sizes = [2, 32], strides = [1, 1]} : vector<2x96xf32> to vector<2x32xf32>
    %215 = vector.extract_strided_slice %205 {offsets = [0, 96], sizes = [2, 32], strides = [1, 1]} : vector<2x128xf32> to vector<2x32xf32>
    %216 = math.tanh %215 : vector<2x32xf32>
    %217 = arith.mulf %213, %198 : vector<2x32xf32>
    %218 = arith.mulf %212, %216 : vector<2x32xf32>
    %219 = arith.addf %217, %218 : vector<2x32xf32>
    %220 = math.tanh %219 : vector<2x32xf32>
    %221 = arith.mulf %214, %220 : vector<2x32xf32>
    %c2_71 = arith.constant 2 : index
    %c0_72 = arith.constant 0 : index
    %222 = vector.load %arg10[%c2_71, %c0_72] : memref<16x32xf32, #tpu.memory_space<vmem>>, vector<2x32xf32>
    tpu.vector_store %arg10[%c2_71, %c0_72], %221 {strides = array<i32>} : memref<16x32xf32, #tpu.memory_space<vmem>>, vector<2x32xf32>,
    %c4_73 = arith.constant 4 : index
    %c0_74 = arith.constant 0 : index
    %223 = vector.load %arg11[%c4_73, %c0_74] : memref<16x128xf32, #tpu.memory_space<vmem>>, vector<2x128xf32>
    %224 = arith.truncf %221 : vector<2x32xf32> to vector<2x32xbf16>
    %cst_75 = arith.constant dense<0.000000e+00> : vector<2x128xf32>
    %225 = tpu.matmul %224, %175, %cst_75 {dimension_numbers = #tpu.dot_dimension_numbers<[1], [0], [0], [1], [0, 0, 1, 1], [], []>} : vector<2x32xbf16>, vector<32x128xbf16>, vector<2x128xf32> -> vector<2x128xf32>
    %226 = arith.addf %223, %225 : vector<2x128xf32>
    %227 = vector.extract_strided_slice %226 {offsets = [0, 0], sizes = [2, 96], strides = [1, 1]} : vector<2x128xf32> to vector<2x96xf32>
    %228 = arith.negf %227 : vector<2x96xf32>
    %229 = math.exp %228 : vector<2x96xf32>
    %cst_76 = arith.constant 1.000000e+00 : f32
    %230 = vector.broadcast %cst_76 : f32 to vector<2x96xf32>
    %231 = arith.addf %230, %229 : vector<2x96xf32>
    %232 = arith.divf %230, %231 : vector<2x96xf32>
    %233 = vector.extract_strided_slice %232 {offsets = [0, 0], sizes = [2, 32], strides = [1, 1]} : vector<2x96xf32> to vector<2x32xf32>
    %234 = vector.extract_strided_slice %232 {offsets = [0, 32], sizes = [2, 32], strides = [1, 1]} : vector<2x96xf32> to vector<2x32xf32>
    %235 = vector.extract_strided_slice %232 {offsets = [0, 64], sizes = [2, 32], strides = [1, 1]} : vector<2x96xf32> to vector<2x32xf32>
    %236 = vector.extract_strided_slice %226 {offsets = [0, 96], sizes = [2, 32], strides = [1, 1]} : vector<2x128xf32> to vector<2x32xf32>
    %237 = math.tanh %236 : vector<2x32xf32>
    %238 = arith.mulf %234, %219 : vector<2x32xf32>
    %239 = arith.mulf %233, %237 : vector<2x32xf32>
    %240 = arith.addf %238, %239 : vector<2x32xf32>
    %241 = math.tanh %240 : vector<2x32xf32>
    %242 = arith.mulf %235, %241 : vector<2x32xf32>
    %c4_77 = arith.constant 4 : index
    %c0_78 = arith.constant 0 : index
    %243 = vector.load %arg10[%c4_77, %c0_78] : memref<16x32xf32, #tpu.memory_space<vmem>>, vector<2x32xf32>
    tpu.vector_store %arg10[%c4_77, %c0_78], %242 {strides = array<i32>} : memref<16x32xf32, #tpu.memory_space<vmem>>, vector<2x32xf32>,
    %c6_79 = arith.constant 6 : index
    %c0_80 = arith.constant 0 : index
    %244 = vector.load %arg11[%c6_79, %c0_80] : memref<16x128xf32, #tpu.memory_space<vmem>>, vector<2x128xf32>
    %245 = arith.truncf %242 : vector<2x32xf32> to vector<2x32xbf16>
    %cst_81 = arith.constant dense<0.000000e+00> : vector<2x128xf32>
    %246 = tpu.matmul %245, %175, %cst_81 {dimension_numbers = #tpu.dot_dimension_numbers<[1], [0], [0], [1], [0, 0, 1, 1], [], []>} : vector<2x32xbf16>, vector<32x128xbf16>, vector<2x128xf32> -> vector<2x128xf32>
    %247 = arith.addf %244, %246 : vector<2x128xf32>
    %248 = vector.extract_strided_slice %247 {offsets = [0, 0], sizes = [2, 96], strides = [1, 1]} : vector<2x128xf32> to vector<2x96xf32>
    %249 = arith.negf %248 : vector<2x96xf32>
    %250 = math.exp %249 : vector<2x96xf32>
    %cst_82 = arith.constant 1.000000e+00 : f32
    %251 = vector.broadcast %cst_82 : f32 to vector<2x96xf32>
    %252 = arith.addf %251, %250 : vector<2x96xf32>
    %253 = arith.divf %251, %252 : vector<2x96xf32>
    %254 = vector.extract_strided_slice %253 {offsets = [0, 0], sizes = [2, 32], strides = [1, 1]} : vector<2x96xf32> to vector<2x32xf32>
    %255 = vector.extract_strided_slice %253 {offsets = [0, 32], sizes = [2, 32], strides = [1, 1]} : vector<2x96xf32> to vector<2x32xf32>
    %256 = vector.extract_strided_slice %253 {offsets = [0, 64], sizes = [2, 32], strides = [1, 1]} : vector<2x96xf32> to vector<2x32xf32>
    %257 = vector.extract_strided_slice %247 {offsets = [0, 96], sizes = [2, 32], strides = [1, 1]} : vector<2x128xf32> to vector<2x32xf32>
    %258 = math.tanh %257 : vector<2x32xf32>
    %259 = arith.mulf %255, %240 : vector<2x32xf32>
    %260 = arith.mulf %254, %258 : vector<2x32xf32>
    %261 = arith.addf %259, %260 : vector<2x32xf32>
    %262 = math.tanh %261 : vector<2x32xf32>
    %263 = arith.mulf %256, %262 : vector<2x32xf32>
    %c6_83 = arith.constant 6 : index
    %c0_84 = arith.constant 0 : index
    %264 = vector.load %arg10[%c6_83, %c0_84] : memref<16x32xf32, #tpu.memory_space<vmem>>, vector<2x32xf32>
    tpu.vector_store %arg10[%c6_83, %c0_84], %263 {strides = array<i32>} : memref<16x32xf32, #tpu.memory_space<vmem>>, vector<2x32xf32>,
    %c8_85 = arith.constant 8 : index
    %c0_86 = arith.constant 0 : index
    %265 = vector.load %arg11[%c8_85, %c0_86] : memref<16x128xf32, #tpu.memory_space<vmem>>, vector<2x128xf32>
    %266 = arith.truncf %263 : vector<2x32xf32> to vector<2x32xbf16>
    %cst_87 = arith.constant dense<0.000000e+00> : vector<2x128xf32>
    %267 = tpu.matmul %266, %175, %cst_87 {dimension_numbers = #tpu.dot_dimension_numbers<[1], [0], [0], [1], [0, 0, 1, 1], [], []>} : vector<2x32xbf16>, vector<32x128xbf16>, vector<2x128xf32> -> vector<2x128xf32>
    %268 = arith.addf %265, %267 : vector<2x128xf32>
    %269 = vector.extract_strided_slice %268 {offsets = [0, 0], sizes = [2, 96], strides = [1, 1]} : vector<2x128xf32> to vector<2x96xf32>
    %270 = arith.negf %269 : vector<2x96xf32>
    %271 = math.exp %270 : vector<2x96xf32>
    %cst_88 = arith.constant 1.000000e+00 : f32
    %272 = vector.broadcast %cst_88 : f32 to vector<2x96xf32>
    %273 = arith.addf %272, %271 : vector<2x96xf32>
    %274 = arith.divf %272, %273 : vector<2x96xf32>
    %275 = vector.extract_strided_slice %274 {offsets = [0, 0], sizes = [2, 32], strides = [1, 1]} : vector<2x96xf32> to vector<2x32xf32>
    %276 = vector.extract_strided_slice %274 {offsets = [0, 32], sizes = [2, 32], strides = [1, 1]} : vector<2x96xf32> to vector<2x32xf32>
    %277 = vector.extract_strided_slice %274 {offsets = [0, 64], sizes = [2, 32], strides = [1, 1]} : vector<2x96xf32> to vector<2x32xf32>
    %278 = vector.extract_strided_slice %268 {offsets = [0, 96], sizes = [2, 32], strides = [1, 1]} : vector<2x128xf32> to vector<2x32xf32>
    %279 = math.tanh %278 : vector<2x32xf32>
    %280 = arith.mulf %276, %261 : vector<2x32xf32>
    %281 = arith.mulf %275, %279 : vector<2x32xf32>
    %282 = arith.addf %280, %281 : vector<2x32xf32>
    %283 = math.tanh %282 : vector<2x32xf32>
    %284 = arith.mulf %277, %283 : vector<2x32xf32>
    %c8_89 = arith.constant 8 : index
    %c0_90 = arith.constant 0 : index
    %285 = vector.load %arg10[%c8_89, %c0_90] : memref<16x32xf32, #tpu.memory_space<vmem>>, vector<2x32xf32>
    tpu.vector_store %arg10[%c8_89, %c0_90], %284 {strides = array<i32>} : memref<16x32xf32, #tpu.memory_space<vmem>>, vector<2x32xf32>,
    %c10_91 = arith.constant 10 : index
    %c0_92 = arith.constant 0 : index
    %286 = vector.load %arg11[%c10_91, %c0_92] : memref<16x128xf32, #tpu.memory_space<vmem>>, vector<2x128xf32>
    %287 = arith.truncf %284 : vector<2x32xf32> to vector<2x32xbf16>
    %cst_93 = arith.constant dense<0.000000e+00> : vector<2x128xf32>
    %288 = tpu.matmul %287, %175, %cst_93 {dimension_numbers = #tpu.dot_dimension_numbers<[1], [0], [0], [1], [0, 0, 1, 1], [], []>} : vector<2x32xbf16>, vector<32x128xbf16>, vector<2x128xf32> -> vector<2x128xf32>
    %289 = arith.addf %286, %288 : vector<2x128xf32>
    %290 = vector.extract_strided_slice %289 {offsets = [0, 0], sizes = [2, 96], strides = [1, 1]} : vector<2x128xf32> to vector<2x96xf32>
    %291 = arith.negf %290 : vector<2x96xf32>
    %292 = math.exp %291 : vector<2x96xf32>
    %cst_94 = arith.constant 1.000000e+00 : f32
    %293 = vector.broadcast %cst_94 : f32 to vector<2x96xf32>
    %294 = arith.addf %293, %292 : vector<2x96xf32>
    %295 = arith.divf %293, %294 : vector<2x96xf32>
    %296 = vector.extract_strided_slice %295 {offsets = [0, 0], sizes = [2, 32], strides = [1, 1]} : vector<2x96xf32> to vector<2x32xf32>
    %297 = vector.extract_strided_slice %295 {offsets = [0, 32], sizes = [2, 32], strides = [1, 1]} : vector<2x96xf32> to vector<2x32xf32>
    %298 = vector.extract_strided_slice %295 {offsets = [0, 64], sizes = [2, 32], strides = [1, 1]} : vector<2x96xf32> to vector<2x32xf32>
    %299 = vector.extract_strided_slice %289 {offsets = [0, 96], sizes = [2, 32], strides = [1, 1]} : vector<2x128xf32> to vector<2x32xf32>
    %300 = math.tanh %299 : vector<2x32xf32>
    %301 = arith.mulf %297, %282 : vector<2x32xf32>
    %302 = arith.mulf %296, %300 : vector<2x32xf32>
    %303 = arith.addf %301, %302 : vector<2x32xf32>
    %304 = math.tanh %303 : vector<2x32xf32>
    %305 = arith.mulf %298, %304 : vector<2x32xf32>
    %c10_95 = arith.constant 10 : index
    %c0_96 = arith.constant 0 : index
    %306 = vector.load %arg10[%c10_95, %c0_96] : memref<16x32xf32, #tpu.memory_space<vmem>>, vector<2x32xf32>
    tpu.vector_store %arg10[%c10_95, %c0_96], %305 {strides = array<i32>} : memref<16x32xf32, #tpu.memory_space<vmem>>, vector<2x32xf32>,
    %c12_97 = arith.constant 12 : index
    %c0_98 = arith.constant 0 : index
    %307 = vector.load %arg11[%c12_97, %c0_98] : memref<16x128xf32, #tpu.memory_space<vmem>>, vector<2x128xf32>
    %308 = arith.truncf %305 : vector<2x32xf32> to vector<2x32xbf16>
    %cst_99 = arith.constant dense<0.000000e+00> : vector<2x128xf32>
    %309 = tpu.matmul %308, %175, %cst_99 {dimension_numbers = #tpu.dot_dimension_numbers<[1], [0], [0], [1], [0, 0, 1, 1], [], []>} : vector<2x32xbf16>, vector<32x128xbf16>, vector<2x128xf32> -> vector<2x128xf32>
    %310 = arith.addf %307, %309 : vector<2x128xf32>
    %311 = vector.extract_strided_slice %310 {offsets = [0, 0], sizes = [2, 96], strides = [1, 1]} : vector<2x128xf32> to vector<2x96xf32>
    %312 = arith.negf %311 : vector<2x96xf32>
    %313 = math.exp %312 : vector<2x96xf32>
    %cst_100 = arith.constant 1.000000e+00 : f32
    %314 = vector.broadcast %cst_100 : f32 to vector<2x96xf32>
    %315 = arith.addf %314, %313 : vector<2x96xf32>
    %316 = arith.divf %314, %315 : vector<2x96xf32>
    %317 = vector.extract_strided_slice %316 {offsets = [0, 0], sizes = [2, 32], strides = [1, 1]} : vector<2x96xf32> to vector<2x32xf32>
    %318 = vector.extract_strided_slice %316 {offsets = [0, 32], sizes = [2, 32], strides = [1, 1]} : vector<2x96xf32> to vector<2x32xf32>
    %319 = vector.extract_strided_slice %316 {offsets = [0, 64], sizes = [2, 32], strides = [1, 1]} : vector<2x96xf32> to vector<2x32xf32>
    %320 = vector.extract_strided_slice %310 {offsets = [0, 96], sizes = [2, 32], strides = [1, 1]} : vector<2x128xf32> to vector<2x32xf32>
    %321 = math.tanh %320 : vector<2x32xf32>
    %322 = arith.mulf %318, %303 : vector<2x32xf32>
    %323 = arith.mulf %317, %321 : vector<2x32xf32>
    %324 = arith.addf %322, %323 : vector<2x32xf32>
    %325 = math.tanh %324 : vector<2x32xf32>
    %326 = arith.mulf %319, %325 : vector<2x32xf32>
    %c12_101 = arith.constant 12 : index
    %c0_102 = arith.constant 0 : index
    %327 = vector.load %arg10[%c12_101, %c0_102] : memref<16x32xf32, #tpu.memory_space<vmem>>, vector<2x32xf32>
    tpu.vector_store %arg10[%c12_101, %c0_102], %326 {strides = array<i32>} : memref<16x32xf32, #tpu.memory_space<vmem>>, vector<2x32xf32>,
    %c14_103 = arith.constant 14 : index
    %c0_104 = arith.constant 0 : index
    %328 = vector.load %arg11[%c14_103, %c0_104] : memref<16x128xf32, #tpu.memory_space<vmem>>, vector<2x128xf32>
    %329 = arith.truncf %326 : vector<2x32xf32> to vector<2x32xbf16>
    %cst_105 = arith.constant dense<0.000000e+00> : vector<2x128xf32>
    %330 = tpu.matmul %329, %175, %cst_105 {dimension_numbers = #tpu.dot_dimension_numbers<[1], [0], [0], [1], [0, 0, 1, 1], [], []>} : vector<2x32xbf16>, vector<32x128xbf16>, vector<2x128xf32> -> vector<2x128xf32>
    %331 = arith.addf %328, %330 : vector<2x128xf32>
    %332 = vector.extract_strided_slice %331 {offsets = [0, 0], sizes = [2, 96], strides = [1, 1]} : vector<2x128xf32> to vector<2x96xf32>
    %333 = arith.negf %332 : vector<2x96xf32>
    %334 = math.exp %333 : vector<2x96xf32>
    %cst_106 = arith.constant 1.000000e+00 : f32
    %335 = vector.broadcast %cst_106 : f32 to vector<2x96xf32>
    %336 = arith.addf %335, %334 : vector<2x96xf32>
    %337 = arith.divf %335, %336 : vector<2x96xf32>
    %338 = vector.extract_strided_slice %337 {offsets = [0, 0], sizes = [2, 32], strides = [1, 1]} : vector<2x96xf32> to vector<2x32xf32>
    %339 = vector.extract_strided_slice %337 {offsets = [0, 32], sizes = [2, 32], strides = [1, 1]} : vector<2x96xf32> to vector<2x32xf32>
    %340 = vector.extract_strided_slice %337 {offsets = [0, 64], sizes = [2, 32], strides = [1, 1]} : vector<2x96xf32> to vector<2x32xf32>
    %341 = vector.extract_strided_slice %331 {offsets = [0, 96], sizes = [2, 32], strides = [1, 1]} : vector<2x128xf32> to vector<2x32xf32>
    %342 = math.tanh %341 : vector<2x32xf32>
    %343 = arith.mulf %339, %324 : vector<2x32xf32>
    %344 = arith.mulf %338, %342 : vector<2x32xf32>
    %345 = arith.addf %343, %344 : vector<2x32xf32>
    %346 = math.tanh %345 : vector<2x32xf32>
    %347 = arith.mulf %340, %346 : vector<2x32xf32>
    %c14_107 = arith.constant 14 : index
    %c0_108 = arith.constant 0 : index
    %348 = vector.load %arg10[%c14_107, %c0_108] : memref<16x32xf32, #tpu.memory_space<vmem>>, vector<2x32xf32>
    tpu.vector_store %arg10[%c14_107, %c0_108], %347 {strides = array<i32>} : memref<16x32xf32, #tpu.memory_space<vmem>>, vector<2x32xf32>,
    %c0_109 = arith.constant 0 : index
    %c0_110 = arith.constant 0 : index
    %349 = vector.load %arg10[%c0_109, %c0_110] : memref<16x32xf32, #tpu.memory_space<vmem>>, vector<16x32xf32>
    %350 = arith.truncf %349 : vector<16x32xf32> to vector<16x32xbf16>
    %c0_111 = arith.constant 0 : index
    %c0_112 = arith.constant 0 : index
    %351 = vector.load %arg7[%c0_111, %c0_112] : memref<32x16xbf16, #tpu.memory_space<vmem>>, vector<32x16xbf16>
    %cst_113 = arith.constant dense<0.000000e+00> : vector<16x16xf32>
    %352 = tpu.matmul %350, %351, %cst_113 {dimension_numbers = #tpu.dot_dimension_numbers<[1], [0], [0], [1], [0, 0, 1, 1], [], []>} : vector<16x32xbf16>, vector<32x16xbf16>, vector<16x16xf32> -> vector<16x16xf32>
    %c0_114 = arith.constant 0 : index
    %c0_115 = arith.constant 0 : index
    %353 = vector.load %arg8[%c0_114, %c0_115] : memref<1x16xf32, #tpu.memory_space<vmem>>, vector<1x16xf32>
    %354 = vector.broadcast %353 : vector<1x16xf32> to vector<16x16xf32>
    %355 = arith.addf %352, %354 : vector<16x16xf32>
    %356 = arith.negf %355 : vector<16x16xf32>
    %357 = math.exp %356 : vector<16x16xf32>
    %cst_116 = arith.constant 1.000000e+00 : f32
    %358 = vector.broadcast %cst_116 : f32 to vector<16x16xf32>
    %359 = arith.addf %358, %357 : vector<16x16xf32>
    %360 = arith.divf %358, %359 : vector<16x16xf32>
    %c0_117 = arith.constant 0 : index
    %c0_118 = arith.constant 0 : index
    %361 = vector.load %arg9[%c0_117, %c0_118] : memref<16x16xf32, #tpu.memory_space<vmem>>, vector<16x16xf32>
    tpu.vector_store %arg9[%c0_117, %c0_118], %360 {strides = array<i32>} : memref<16x16xf32, #tpu.memory_space<vmem>>, vector<16x16xf32>,
    return
  }
}

</mosaic_0001>

<bundles_post_ra>
// kernel: rnn_forward.1
= control target key start
LH: loop header
LB: loop body
LE: loop exit
PB: predicated region body
PF: predicated region fallthrough
CT: control target
= control target key end

     0   :  { %14 = vsyncpa [#allocation5], 0  ;;  %s1843_s0 = inlined_call_operand.vmem [shape: bf16[16,16], index: 0, kind: input, shape index: {}]   ;;  %s1844_s1 = inlined_call_operand.vmem [shape: bf16[16,128], index: 1, kind: input, shape index: {}]   ;;  %s1845_s2 = inlined_call_operand.vmem [shape: bf16[32,128], index: 2, kind: input, shape index: {}]   ;;  %s1846_s3 = inlined_call_operand.vmem [shape: f32[1,128], index: 3, kind: input, shape index: {}]   ;;  %s1847_s4 = inlined_call_operand.vmem [shape: bf16[32,128], index: 4, kind: input, shape index: {}]   ;;  %s1848_s5 = inlined_call_operand.hbm [shape: bf16[32,128], index: 5, kind: input, shape index: {}]   ;;  %s1849_s6 = inlined_call_operand.vmem [shape: f32[1,128], index: 6, kind: input, shape index: {}]   ;;  %s1850_s7 = inlined_call_operand.vmem [shape: bf16[32,16], index: 7, kind: input, shape index: {}]   ;;  %s1851_s8 = inlined_call_operand.hbm [shape: f32[1,16], index: 8, kind: input, shape index: {}]   ;;  %s1852_s9 = inlined_call_operand.hbm [shape: f32[16,16], index: 9, kind: output, shape index: {}]  }
   0x1   :  { %15 = vsyncpa [#allocation8], 0 }
   0x2   :  { %16 = vsyncpa [#allocation6], 0  ;;  %s31_s11 = sshll.u32 %s1848_s5, 4  ;;  %s1571_s12 = smov [#allocation4]   ;;  %s32_s11 = int_to_ptr.hbm [resolvable:$true] %s31_s11 }
   0x3   :  { %s33_s13 = sshll.u32 %s1571_s12, 4  ;;  %s49_s16 = sshll.u32 %s1851_s8, 4  ;;  %s34_s13 = int_to_ptr.vmem [resolvable:$true] %s33_s13  ;;  %s50_s16 = int_to_ptr.hbm [resolvable:$true] %s49_s16 }
   0x4   :  { %s1572_s17 = smov 64   ;;  %s1573_s18 = smov 4  }
   0x5   :  { %39 = dma.hbm_to_vmem [thread:$0]  %s32_s11, 256, %s34_s13, [#allocation5], %s1572_s17, %s1572_s17, %s1573_s18  }
   0x6   :  { %s1574_s19 = smov [#allocation7]  }
   0x7   :  { %s51_s20 = sshll.u32 %s1574_s19, 4  ;;  %s52_s20 = int_to_ptr.vmem [resolvable:$true] %s51_s20 }
   0x8   :  { %54 = dma.hbm_to_vmem [thread:$0]  %s50_s16, 16, %s52_s20, [#allocation8]  }
   0x9   :  { %1565 = dma.done.wait [#allocation5], 256  }
   0xa   :  { %1566 = vsyncadd [#allocation5], 4294967040 }
   0xb   :  { %1567 = dma.done.wait [#allocation8], 16  }
   0xc   :  { %1568 = vsyncadd [#allocation8], 4294967280  ;;  %v1336_v0 = vld [vmem:[%s1844_s1] sm:$0xff]  ;;  %vm87_vm0 = vcmask 130048   ;;  %s1575_s1 = smov 32   ;;  %v1338_v28 = vld [vmem:[%s1845_s2 + $0x8] sm:$0xff] }
   0xd   :  { %v1339_v1 = vld [vmem:[%s1843_s0] sm:$0xff]  ;;  %98 = vmatpush.bf16.msra.mxu0 %v1336_v0  ;;  %178 = vmatpush.bf16.msra.mxu1 %v1338_v28  ;;  %vm168_vm5 = vcmask 261120   ;;  %s1247_s16 = sshll.u32 %s1852_s9, 4  ;;  %s1578_s18 = smov 8   ;;  %s1248_s16 = int_to_ptr.hbm [resolvable:$true] %s1247_s16 }
   0xe   :  { %v1354_v2 = vld [vmem:[%s1846_s3] ss:$0 sm:$0xff]  ;;  %242 = vmatpush.bf16.msra.mxu2 %v1338_v28  ;;  %306 = vmatpush.bf16.msra.mxu3 %v1338_v28 }
   0xf   :  { %v1337_v29 = vld [vmem:[%s1845_s2] sm:$0xff] }
  0x10   :  { %1269 = vmatmul.msk.bf16.vlgmr.msra.gmra.mxu0 %vm87_vm0, %v1339_v1 }
  0x11   :  { %370 = vmatpush.bf16.msrb.mxu0 %v1338_v28  ;;  %179 = vmatpush.bf16.msra.mxu1 %v1337_v29 }
  0x12   :  { %243 = vmatpush.bf16.msra.mxu2 %v1337_v29  ;;  %307 = vmatpush.bf16.msra.mxu3 %v1337_v29 }
  0x15   :  { %371 = vmatpush.bf16.msrb.mxu0 %v1337_v29  ;;  %434 = vmatpush.bf16.msrb.mxu1 %v1338_v28 }
  0x16   :  { %498 = vmatpush.bf16.msrb.mxu2 %v1338_v28  ;;  %562 = vmatpush.bf16.msrb.mxu3 %v1338_v28 }
  0x19   :  { %435 = vmatpush.bf16.msrb.mxu1 %v1337_v29 }
  0x1a   :  { %499 = vmatpush.bf16.msrb.mxu2 %v1337_v29  ;;  %563 = vmatpush.bf16.msrb.mxu3 %v1337_v29 }
  0x8d   :  { %v100_v3 = vpop.f32.mrf.mxu0 }
  0x8e   :  { %v101_v4 = vadd.f32 %v1354_v2, %v100_v3 }
  0x90   :  { %105 = vst [vmem:[#allocation3] sm:$0xff] %v101_v4 }
  0x95   :  { %v102_v5 = vpop.f32.mrf.mxu0 }
  0x96   :  { %v103_v6 = vadd.f32 %v1354_v2, %v102_v5 }
  0x97   :  { %v107_v7 = vld [vmem:[#allocation3] sm:$0x3]  ;;  %v151_v34 = vld [vmem:[#allocation3 + $0x2] sm:$0x3]  ;;  %v228_v62 = vld [vmem:[#allocation3 + $0x4] sm:$0x3] }
  0x98   :  { %106 = vst [vmem:[#allocation3 + $0x8] sm:$0xff] %v103_v6  ;;  %1357 = vtanh.f32 %v107_v7  ;;  %v1270_v9 = vmul.f32 -1.442695, %v107_v7 }
  0x9a   :  { %1359 = vpow2.f32 %v1270_v9 }
  0x9e   :  { %v1358_v8 = vpop.eup %1357 }
  0x9f   :  { %130 = vrot.lane.b32.xlu0 %v1358_v8, %s1575_s1 }
  0xa0   :  { %v1360_v10 = vpop.eup %1359 }
  0xa1   :  { %v111_v11 = vadd.f32 1.0, %v1360_v10 }
  0xa3   :  { %1361 = vrcp.f32 %v111_v11  ;;  %v123_v17 = vand.u32 2147483648, %v111_v11  ;;  %vm117_vm2 = vweird.f32 %v111_v11  ;;  %v121_v18 = vand.u32 2147483647, %v111_v11 }
  0xa5   :  { %v124_v20 = vor.u32 1.1754944e-38, %v123_v17  ;;  %vm122_vm4 = vcmp.eq.f32.partialorder %v121_v18, 8.507059e+37 }
  0xa9   :  { %v1362_v12 = vpop.eup %1361 }
  0xaa   :  { %v113_v13 = vmul.f32 %v1362_v12, %v111_v11  ;;  %vm118_vm1 = vweird.f32 %v1362_v12 }
  0xab   :  { %vm119_vm3 = vmor %vm117_vm2, %vm118_vm1 }
  0xac   :  { %v114_v14 = vsub.f32 1.0, %v113_v13 }
  0xae   :  { %v115_v15 = vmul.f32 %v1362_v12, %v114_v14 }
  0xb0   :  { %v116_v16 = vadd.f32 %v1362_v12, %v115_v15 }
  0xb2   :  { %v120_v19 = vsel %vm119_vm3, %v1362_v12, %v116_v16 }
  0xb3   :  { %v125_v22 = vsel %vm122_vm4, %v124_v20, %v120_v19 }
  0xb4   :  { %v128_v24 = vmul.f32 0.0, %v125_v22 }
 0x111   :  { %v131_v21 = vpop.permute.xlu0 %130 }
 0x112   :  { %v133_v23 = vmul.f32 %v131_v21, %v125_v22 }
 0x114   :  { %135 = vrot.lane.b32.xlu0 %v133_v23, %s1575_s1 }
 0x186   :  { %v136_v25 = vpop.permute.xlu0 %135 }
 0x187   :  { %v138_v26 = vadd.f32 %v136_v25, %v128_v24 }
 0x189   :  { %1363 = vtanh.f32 %v138_v26 }
 0x18f   :  { %v1364_v27 = vpop.eup %1363 }
 0x190   :  { %141 = vrot.lane.b32.xlu1 %v1364_v27, %s1575_s1 }
 0x202   :  { %v142_v30 = vpop.permute.xlu1 %141 }
 0x203   :  { %v1656_v31 = vmul.f32 %v142_v30, %v125_v22 }
 0x205   :  { %v152_v32 = vpack.c.bf16 %v1656_v31, %v1656_v31 }
 0x207   :  { %154 = vrot.lane.b32.xlu1 %v152_v32, %s1572_s17 }
 0x279   :  { %v155_v33 = vpop.permute.xlu1 %154 }
 0x27a   :  { %1279 = vmatmul.msk.bf16.vlgmr.msra.gmra.mxu1 %vm168_vm5, %v155_v33 }
 0x2f7   :  { %v181_v35 = vpop.f32.mrf.mxu1 }
 0x2f8   :  { %v185_v36 = vadd.f32 %v181_v35, %v151_v34 }
 0x2fa   :  { %1365 = vtanh.f32 %v185_v36  ;;  %v1280_v39 = vmul.f32 -1.442695, %v185_v36 }
 0x2fc   :  { %1367 = vpow2.f32 %v1280_v39 }
 0x2ff   :  { %v183_v37 = vpop.f32.mrf.mxu1 }
 0x300   :  { %v1366_v38 = vpop.eup %1365 }
 0x301   :  { %208 = vrot.lane.b32.xlu2 %v1366_v38, %s1575_s1 }
 0x302   :  { %v1368_v40 = vpop.eup %1367 }
 0x303   :  { %v189_v41 = vadd.f32 1.0, %v1368_v40 }
 0x305   :  { %1369 = vrcp.f32 %v189_v41  ;;  %v201_v47 = vand.u32 2147483648, %v189_v41  ;;  %vm195_vm7 = vweird.f32 %v189_v41  ;;  %v199_v48 = vand.u32 2147483647, %v189_v41 }
 0x307   :  { %v202_v50 = vor.u32 1.1754944e-38, %v201_v47  ;;  %vm200_vm9 = vcmp.eq.f32.partialorder %v199_v48, 8.507059e+37 }
 0x30b   :  { %v1370_v42 = vpop.eup %1369 }
 0x30c   :  { %v191_v43 = vmul.f32 %v1370_v42, %v189_v41  ;;  %vm196_vm6 = vweird.f32 %v1370_v42 }
 0x30d   :  { %vm197_vm8 = vmor %vm195_vm7, %vm196_vm6 }
 0x30e   :  { %v192_v44 = vsub.f32 1.0, %v191_v43 }
 0x310   :  { %v193_v45 = vmul.f32 %v1370_v42, %v192_v44 }
 0x312   :  { %v194_v46 = vadd.f32 %v1370_v42, %v193_v45 }
 0x314   :  { %v198_v49 = vsel %vm197_vm8, %v1370_v42, %v194_v46 }
 0x315   :  { %v203_v52 = vsel %vm200_vm9, %v202_v50, %v198_v49 }
 0x316   :  { %v206_v54 = vmul.f32 %v203_v52, %v138_v26  ;;  %v292_v26 = vld [vmem:[#allocation3 + $0x6] sm:$0x3] }
 0x35b   :  { %v209_v51 = vpop.permute.xlu2 %208 }
 0x35c   :  { %v211_v53 = vmul.f32 %v209_v51, %v203_v52 }
 0x35e   :  { %213 = vrot.lane.b32.xlu2 %v211_v53, %s1575_s1 }
 0x3b8   :  { %v214_v55 = vpop.permute.xlu2 %213 }
 0x3b9   :  { %v216_v56 = vadd.f32 %v214_v55, %v206_v54  ;;  %v356_v55 = vld [vmem:[#allocation3 + $0x8] sm:$0x3] }
 0x3bb   :  { %1371 = vtanh.f32 %v216_v56 }
 0x3c1   :  { %v1372_v57 = vpop.eup %1371 }
 0x3c2   :  { %219 = vrot.lane.b32.xlu0 %v1372_v57, %s1575_s1 }
 0x434   :  { %v220_v58 = vpop.permute.xlu0 %219 }
 0x435   :  { %v1665_v59 = vmul.f32 %v220_v58, %v203_v52 }
 0x437   :  { %v229_v60 = vpack.c.bf16 %v1665_v59, %v1665_v59 }
 0x439   :  { %231 = vrot.lane.b32.xlu1 %v229_v60, %s1572_s17 }
 0x4ab   :  { %v232_v61 = vpop.permute.xlu1 %231 }
 0x4ac   :  { %1281 = vmatmul.msk.bf16.vlgmr.msra.gmra.mxu2 %vm168_vm5, %v232_v61 }
 0x52f   :  { %v245_v63 = vpop.f32.mrf.mxu2 }
 0x530   :  { %v249_v0 = vadd.f32 %v245_v63, %v228_v62 }
 0x532   :  { %1373 = vtanh.f32 %v249_v0  ;;  %v1282_v3 = vmul.f32 -1.442695, %v249_v0 }
 0x534   :  { %1375 = vpow2.f32 %v1282_v3 }
 0x537   :  { %v247_v1 = vpop.f32.mrf.mxu2 }
 0x538   :  { %v1374_v2 = vpop.eup %1373 }
 0x539   :  { %272 = vrot.lane.b32.xlu2 %v1374_v2, %s1575_s1 }
 0x53a   :  { %v1376_v4 = vpop.eup %1375 }
 0x53b   :  { %v253_v5 = vadd.f32 1.0, %v1376_v4 }
 0x53d   :  { %1377 = vrcp.f32 %v253_v5  ;;  %v265_v11 = vand.u32 2147483648, %v253_v5  ;;  %vm259_vm11 = vweird.f32 %v253_v5  ;;  %v263_v12 = vand.u32 2147483647, %v253_v5 }
 0x53f   :  { %v266_v14 = vor.u32 1.1754944e-38, %v265_v11  ;;  %vm264_vm13 = vcmp.eq.f32.partialorder %v263_v12, 8.507059e+37 }
 0x543   :  { %v1378_v6 = vpop.eup %1377 }
 0x544   :  { %v255_v7 = vmul.f32 %v1378_v6, %v253_v5  ;;  %vm260_vm10 = vweird.f32 %v1378_v6 }
 0x545   :  { %vm261_vm12 = vmor %vm259_vm11, %vm260_vm10 }
 0x546   :  { %v256_v8 = vsub.f32 1.0, %v255_v7 }
 0x548   :  { %v257_v9 = vmul.f32 %v1378_v6, %v256_v8 }
 0x54a   :  { %v258_v10 = vadd.f32 %v1378_v6, %v257_v9 }
 0x54c   :  { %v262_v13 = vsel %vm261_vm12, %v1378_v6, %v258_v10 }
 0x54d   :  { %v267_v16 = vsel %vm264_vm13, %v266_v14, %v262_v13 }
 0x54e   :  { %v270_v18 = vmul.f32 %v267_v16, %v216_v56 }
 0x593   :  { %v273_v15 = vpop.permute.xlu2 %272 }
 0x594   :  { %v275_v17 = vmul.f32 %v273_v15, %v267_v16 }
 0x596   :  { %277 = vrot.lane.b32.xlu0 %v275_v17, %s1575_s1 }
 0x608   :  { %v278_v19 = vpop.permute.xlu0 %277 }
 0x609   :  { %v280_v20 = vadd.f32 %v278_v19, %v270_v18 }
 0x60b   :  { %1379 = vtanh.f32 %v280_v20 }
 0x611   :  { %v1380_v21 = vpop.eup %1379 }
 0x612   :  { %283 = vrot.lane.b32.xlu1 %v1380_v21, %s1575_s1 }
 0x684   :  { %v284_v22 = vpop.permute.xlu1 %283 }
 0x685   :  { %v1674_v23 = vmul.f32 %v284_v22, %v267_v16 }
 0x687   :  { %v293_v24 = vpack.c.bf16 %v1674_v23, %v1674_v23 }
 0x689   :  { %295 = vrot.lane.b32.xlu2 %v293_v24, %s1572_s17 }
 0x6e3   :  { %v296_v25 = vpop.permute.xlu2 %295 }
 0x6e4   :  { %1283 = vmatmul.msk.bf16.vlgmr.msra.gmra.mxu3 %vm168_vm5, %v296_v25 }
 0x767   :  { %v309_v27 = vpop.f32.mrf.mxu3 }
 0x768   :  { %v313_v28 = vadd.f32 %v309_v27, %v292_v26 }
 0x76a   :  { %1381 = vtanh.f32 %v313_v28  ;;  %v1284_v32 = vmul.f32 -1.442695, %v313_v28 }
 0x76c   :  { %1383 = vpow2.f32 %v1284_v32 }
 0x76f   :  { %v311_v29 = vpop.f32.mrf.mxu3 }
 0x770   :  { %v1382_v30 = vpop.eup %1381 }
 0x771   :  { %336 = vrot.lane.b32.xlu0 %v1382_v30, %s1575_s1 }
 0x772   :  { %v1384_v33 = vpop.eup %1383 }
 0x773   :  { %v317_v34 = vadd.f32 1.0, %v1384_v33 }
 0x775   :  { %1385 = vrcp.f32 %v317_v34  ;;  %v329_v40 = vand.u32 2147483648, %v317_v34  ;;  %vm323_vm15 = vweird.f32 %v317_v34  ;;  %v327_v41 = vand.u32 2147483647, %v317_v34 }
 0x777   :  { %v330_v43 = vor.u32 1.1754944e-38, %v329_v40  ;;  %vm328_vm2 = vcmp.eq.f32.partialorder %v327_v41, 8.507059e+37 }
 0x77b   :  { %v1386_v35 = vpop.eup %1385 }
 0x77c   :  { %v319_v36 = vmul.f32 %v1386_v35, %v317_v34  ;;  %vm324_vm14 = vweird.f32 %v1386_v35 }
 0x77d   :  { %vm325_vm1 = vmor %vm323_vm15, %vm324_vm14 }
 0x77e   :  { %v320_v37 = vsub.f32 1.0, %v319_v36 }
 0x780   :  { %v321_v38 = vmul.f32 %v1386_v35, %v320_v37 }
 0x782   :  { %v322_v39 = vadd.f32 %v1386_v35, %v321_v38 }
 0x784   :  { %v326_v42 = vsel %vm325_vm1, %v1386_v35, %v322_v39 }
 0x785   :  { %v331_v45 = vsel %vm328_vm2, %v330_v43, %v326_v42 }
 0x786   :  { %v334_v47 = vmul.f32 %v331_v45, %v280_v20  ;;  %v420_v20 = vld [vmem:[#allocation3 + $0xa] sm:$0x3] }
 0x7e3   :  { %v337_v44 = vpop.permute.xlu0 %336 }
 0x7e4   :  { %v339_v46 = vmul.f32 %v337_v44, %v331_v45 }
 0x7e6   :  { %341 = vrot.lane.b32.xlu1 %v339_v46, %s1575_s1 }
 0x858   :  { %v342_v48 = vpop.permute.xlu1 %341 }
 0x859   :  { %v344_v49 = vadd.f32 %v342_v48, %v334_v47 }
 0x85b   :  { %1387 = vtanh.f32 %v344_v49 }
 0x861   :  { %v1388_v50 = vpop.eup %1387 }
 0x862   :  { %347 = vrot.lane.b32.xlu2 %v1388_v50, %s1575_s1  ;;  %v484_v50 = vld [vmem:[#allocation3 + $0xc] sm:$0x3] }
 0x8bc   :  { %v348_v51 = vpop.permute.xlu2 %347 }
 0x8bd   :  { %v1683_v52 = vmul.f32 %v348_v51, %v331_v45 }
 0x8bf   :  { %v357_v53 = vpack.c.bf16 %v1683_v52, %v1683_v52 }
 0x8c1   :  { %359 = vrot.lane.b32.xlu0 %v357_v53, %s1572_s17 }
 0x933   :  { %v360_v54 = vpop.permute.xlu0 %359 }
 0x934   :  { %1285 = vmatmul.msk.bf16.vlgmr.msrb.gmra.mxu0 %vm168_vm5, %v360_v54 }
 0x9b1   :  { %v373_v56 = vpop.f32.mrf.mxu0 }
 0x9b2   :  { %v377_v57 = vadd.f32 %v373_v56, %v356_v55 }
 0x9b4   :  { %1389 = vtanh.f32 %v377_v57  ;;  %v1286_v61 = vmul.f32 -1.442695, %v377_v57 }
 0x9b6   :  { %1391 = vpow2.f32 %v1286_v61 }
 0x9b9   :  { %v375_v58 = vpop.f32.mrf.mxu0 }
 0x9ba   :  { %v1390_v60 = vpop.eup %1389 }
 0x9bb   :  { %400 = vrot.lane.b32.xlu1 %v1390_v60, %s1575_s1 }
 0x9bc   :  { %v1392_v62 = vpop.eup %1391 }
 0x9bd   :  { %v381_v63 = vadd.f32 1.0, %v1392_v62 }
 0x9bf   :  { %1393 = vrcp.f32 %v381_v63  ;;  %v393_v5 = vand.u32 2147483648, %v381_v63  ;;  %vm387_vm4 = vweird.f32 %v381_v63  ;;  %v391_v6 = vand.u32 2147483647, %v381_v63 }
 0x9c1   :  { %v394_v8 = vor.u32 1.1754944e-38, %v393_v5  ;;  %vm392_vm7 = vcmp.eq.f32.partialorder %v391_v6, 8.507059e+37 }
 0x9c5   :  { %v1394_v0 = vpop.eup %1393 }
 0x9c6   :  { %v383_v1 = vmul.f32 %v1394_v0, %v381_v63  ;;  %vm388_vm3 = vweird.f32 %v1394_v0 }
 0x9c7   :  { %vm389_vm6 = vmor %vm387_vm4, %vm388_vm3 }
 0x9c8   :  { %v384_v2 = vsub.f32 1.0, %v383_v1 }
 0x9ca   :  { %v385_v3 = vmul.f32 %v1394_v0, %v384_v2 }
 0x9cc   :  { %v386_v4 = vadd.f32 %v1394_v0, %v385_v3 }
 0x9ce   :  { %v390_v7 = vsel %vm389_vm6, %v1394_v0, %v386_v4  ;;  %vm149_vm6 = vcmask 254976  }
 0x9cf   :  { %v395_v10 = vsel %vm392_vm7, %v394_v8, %v390_v7 }
 0x9d0   :  { %v398_v12 = vmul.f32 %v395_v10, %v344_v49 }
 0xa2d   :  { %v401_v9 = vpop.permute.xlu1 %400 }
 0xa2e   :  { %v403_v11 = vmul.f32 %v401_v9, %v395_v10 }
 0xa30   :  { %405 = vrot.lane.b32.xlu2 %v403_v11, %s1575_s1 }
 0xa8a   :  { %v406_v13 = vpop.permute.xlu2 %405 }
 0xa8b   :  { %v408_v14 = vadd.f32 %v406_v13, %v398_v12 }
 0xa8d   :  { %1395 = vtanh.f32 %v408_v14 }
 0xa93   :  { %v1396_v15 = vpop.eup %1395 }
 0xa94   :  { %411 = vrot.lane.b32.xlu0 %v1396_v15, %s1575_s1 }
 0xb06   :  { %v412_v16 = vpop.permute.xlu0 %411 }
 0xb07   :  { %v1692_v17 = vmul.f32 %v412_v16, %v395_v10  ;;  %v548_v16 = vld [vmem:[#allocation3 + $0xe] sm:$0x3] }
 0xb09   :  { %v421_v18 = vpack.c.bf16 %v1692_v17, %v1692_v17 }
 0xb0b   :  { %423 = vrot.lane.b32.xlu1 %v421_v18, %s1572_s17 }
 0xb7d   :  { %v424_v19 = vpop.permute.xlu1 %423 }
 0xb7e   :  { %1287 = vmatmul.msk.bf16.vlgmr.msrb.gmra.mxu1 %vm168_vm5, %v424_v19 }
 0xbfb   :  { %v437_v21 = vpop.f32.mrf.mxu1 }
 0xbfc   :  { %v441_v22 = vadd.f32 %v437_v21, %v420_v20 }
 0xbfe   :  { %1397 = vtanh.f32 %v441_v22  ;;  %v1288_v26 = vmul.f32 -1.442695, %v441_v22 }
 0xc00   :  { %1399 = vpow2.f32 %v1288_v26 }
 0xc03   :  { %v439_v24 = vpop.f32.mrf.mxu1 }
 0xc04   :  { %v1398_v25 = vpop.eup %1397 }
 0xc05   :  { %464 = vrot.lane.b32.xlu2 %v1398_v25, %s1575_s1 }
 0xc06   :  { %v1400_v27 = vpop.eup %1399 }
 0xc07   :  { %v445_v28 = vadd.f32 1.0, %v1400_v27 }
 0xc09   :  { %1401 = vrcp.f32 %v445_v28  ;;  %v457_v35 = vand.u32 2147483648, %v445_v28  ;;  %vm451_vm9 = vweird.f32 %v445_v28  ;;  %v455_v36 = vand.u32 2147483647, %v445_v28 }
 0xc0b   :  { %v458_v38 = vor.u32 1.1754944e-38, %v457_v35  ;;  %vm456_vm11 = vcmp.eq.f32.partialorder %v455_v36, 8.507059e+37 }
 0xc0f   :  { %v1402_v29 = vpop.eup %1401 }
 0xc10   :  { %v447_v30 = vmul.f32 %v1402_v29, %v445_v28  ;;  %vm452_vm8 = vweird.f32 %v1402_v29 }
 0xc11   :  { %vm453_vm10 = vmor %vm451_vm9, %vm452_vm8 }
 0xc12   :  { %v448_v32 = vsub.f32 1.0, %v447_v30 }
 0xc14   :  { %v449_v33 = vmul.f32 %v1402_v29, %v448_v32 }
 0xc16   :  { %v450_v34 = vadd.f32 %v1402_v29, %v449_v33 }
 0xc18   :  { %v454_v37 = vsel %vm453_vm10, %v1402_v29, %v450_v34 }
 0xc19   :  { %v459_v40 = vsel %vm456_vm11, %v458_v38, %v454_v37 }
 0xc1a   :  { %v462_v42 = vmul.f32 %v459_v40, %v408_v14 }
 0xc5f   :  { %v465_v39 = vpop.permute.xlu2 %464 }
 0xc60   :  { %v467_v41 = vmul.f32 %v465_v39, %v459_v40 }
 0xc62   :  { %469 = vrot.lane.b32.xlu0 %v467_v41, %s1575_s1 }
 0xcd4   :  { %v470_v43 = vpop.permute.xlu0 %469 }
 0xcd5   :  { %v472_v44 = vadd.f32 %v470_v43, %v462_v42 }
 0xcd7   :  { %1403 = vtanh.f32 %v472_v44 }
 0xcdd   :  { %v1404_v45 = vpop.eup %1403 }
 0xcde   :  { %475 = vrot.lane.b32.xlu1 %v1404_v45, %s1575_s1 }
 0xd50   :  { %v476_v46 = vpop.permute.xlu1 %475 }
 0xd51   :  { %v1701_v47 = vmul.f32 %v476_v46, %v459_v40 }
 0xd53   :  { %v485_v48 = vpack.c.bf16 %v1701_v47, %v1701_v47 }
 0xd55   :  { %487 = vrot.lane.b32.xlu2 %v485_v48, %s1572_s17 }
 0xdaf   :  { %v488_v49 = vpop.permute.xlu2 %487 }
 0xdb0   :  { %1289 = vmatmul.msk.bf16.vlgmr.msrb.gmra.mxu2 %vm168_vm5, %v488_v49 }
 0xe33   :  { %v501_v51 = vpop.f32.mrf.mxu2 }
 0xe34   :  { %v505_v53 = vadd.f32 %v501_v51, %v484_v50 }
 0xe36   :  { %1405 = vtanh.f32 %v505_v53  ;;  %v1290_v56 = vmul.f32 -1.442695, %v505_v53 }
 0xe38   :  { %1407 = vpow2.f32 %v1290_v56 }
 0xe3b   :  { %v503_v54 = vpop.f32.mrf.mxu2 }
 0xe3c   :  { %v1406_v55 = vpop.eup %1405  ;;  %v1355_v54 = vld [vmem:[%s1849_s6] ss:$0 sm:$0xff] }
 0xe3d   :  { %528 = vrot.lane.b32.xlu0 %v1406_v55, %s1575_s1 }
 0xe3e   :  { %v1408_v57 = vpop.eup %1407 }
 0xe3f   :  { %v509_v58 = vadd.f32 1.0, %v1408_v57 }
 0xe41   :  { %1409 = vrcp.f32 %v509_v58  ;;  %v521_v1 = vand.u32 2147483648, %v509_v58  ;;  %vm515_vm13 = vweird.f32 %v509_v58  ;;  %v519_v2 = vand.u32 2147483647, %v509_v58 }
 0xe43   :  { %v522_v4 = vor.u32 1.1754944e-38, %v521_v1  ;;  %vm520_vm15 = vcmp.eq.f32.partialorder %v519_v2, 8.507059e+37 }
 0xe47   :  { %v1410_v60 = vpop.eup %1409 }
 0xe48   :  { %v511_v61 = vmul.f32 %v1410_v60, %v509_v58  ;;  %vm516_vm12 = vweird.f32 %v1410_v60 }
 0xe49   :  { %vm517_vm14 = vmor %vm515_vm13, %vm516_vm12 }
 0xe4a   :  { %v512_v62 = vsub.f32 1.0, %v511_v61 }
 0xe4c   :  { %v513_v63 = vmul.f32 %v1410_v60, %v512_v62 }
 0xe4e   :  { %v514_v0 = vadd.f32 %v1410_v60, %v513_v63 }
 0xe50   :  { %v518_v3 = vsel %vm517_vm14, %v1410_v60, %v514_v0 }
 0xe51   :  { %v523_v6 = vsel %vm520_vm15, %v522_v4, %v518_v3 }
 0xe52   :  { %v526_v8 = vmul.f32 %v523_v6, %v472_v44 }
 0xeaf   :  { %v529_v5 = vpop.permute.xlu0 %528 }
 0xeb0   :  { %v531_v7 = vmul.f32 %v529_v5, %v523_v6 }
 0xeb2   :  { %533 = vrot.lane.b32.xlu1 %v531_v7, %s1575_s1 }
 0xf24   :  { %v534_v9 = vpop.permute.xlu1 %533 }
 0xf25   :  { %v536_v10 = vadd.f32 %v534_v9, %v526_v8 }
 0xf27   :  { %1411 = vtanh.f32 %v536_v10 }
 0xf2d   :  { %v1412_v11 = vpop.eup %1411 }
 0xf2e   :  { %539 = vrot.lane.b32.xlu2 %v1412_v11, %s1575_s1 }
 0xf88   :  { %v540_v12 = vpop.permute.xlu2 %539 }
 0xf89   :  { %v542_v13 = vmul.f32 %v540_v12, %v523_v6 }
 0xf8b   :  { %v549_v14 = vpack.c.bf16 %v542_v13, %v542_v13 }
 0xf8d   :  { %551 = vrot.lane.b32.xlu0 %v549_v14, %s1572_s17 }
 0xfff   :  { %v552_v15 = vpop.permute.xlu0 %551 }
0x1000   :  { %1291 = vmatmul.msk.bf16.vlgmr.msrb.gmra.mxu3 %vm168_vm5, %v552_v15 }
0x1083   :  { %v565_v18 = vpop.f32.mrf.mxu3 }
0x1084   :  { %v569_v19 = vadd.f32 %v565_v18, %v548_v16  ;;  %v1343_v18 = vld [vmem:[#allocation4 + $0x8] sm:$0xff] }
0x1085   :  { %727 = vmatpush.bf16.msra.mxu1 %v1343_v18  ;;  %791 = vmatpush.bf16.msra.mxu2 %v1343_v18 }
0x1086   :  { %1413 = vtanh.f32 %v569_v19  ;;  %v1292_v22 = vmul.f32 -1.442695, %v569_v19  ;;  %v1342_v19 = vld [vmem:[#allocation4] sm:$0xff]  ;;  %855 = vmatpush.bf16.msra.mxu3 %v1343_v18 }
0x1088   :  { %1415 = vpow2.f32 %v1292_v22 }
0x1089   :  { %728 = vmatpush.bf16.msra.mxu1 %v1342_v19  ;;  %792 = vmatpush.bf16.msra.mxu2 %v1342_v19 }
0x108a   :  { %856 = vmatpush.bf16.msra.mxu3 %v1342_v19 }
0x108b   :  { %v567_v20 = vpop.f32.mrf.mxu3 }
0x108c   :  { %v1414_v21 = vpop.eup %1413 }
0x108d   :  { %592 = vrot.lane.b32.xlu1 %v1414_v21, %s1575_s1  ;;  %983 = vmatpush.bf16.msrb.mxu1 %v1343_v18 }
0x108e   :  { %v1416_v24 = vpop.eup %1415  ;;  %1047 = vmatpush.bf16.msrb.mxu2 %v1343_v18  ;;  %1111 = vmatpush.bf16.msrb.mxu3 %v1343_v18 }
0x108f   :  { %v573_v25 = vadd.f32 1.0, %v1416_v24 }
0x1091   :  { %1417 = vrcp.f32 %v573_v25  ;;  %v585_v32 = vand.u32 2147483648, %v573_v25  ;;  %vm579_vm2 = vweird.f32 %v573_v25  ;;  %v583_v33 = vand.u32 2147483647, %v573_v25  ;;  %984 = vmatpush.bf16.msrb.mxu1 %v1342_v19 }
0x1092   :  { %1048 = vmatpush.bf16.msrb.mxu2 %v1342_v19  ;;  %1112 = vmatpush.bf16.msrb.mxu3 %v1342_v19 }
0x1093   :  { %v586_v34 = vor.u32 1.1754944e-38, %v585_v32  ;;  %vm584_vm4 = vcmp.eq.f32.partialorder %v583_v33, 8.507059e+37 }
0x1095   :  { %146 = vrot.lane.b32.xlu1 %v1656_v31, %s1572_s17 }
0x1097   :  { %v1418_v26 = vpop.eup %1417 }
0x1098   :  { %v575_v27 = vmul.f32 %v1418_v26, %v573_v25  ;;  %vm580_vm1 = vweird.f32 %v1418_v26 }
0x1099   :  { %vm581_vm3 = vmor %vm579_vm2, %vm580_vm1 }
0x109a   :  { %v576_v28 = vsub.f32 1.0, %v575_v27 }
0x109c   :  { %v577_v29 = vmul.f32 %v1418_v26, %v576_v28 }
0x109d   :  { %352 = vrot.lane.b32.xlu1 %v1683_v52, %s1572_s17 }
0x109e   :  { %v578_v30 = vadd.f32 %v1418_v26, %v577_v29 }
0x10a0   :  { %v582_v31 = vsel %vm581_vm3, %v1418_v26, %v578_v30 }
0x10a1   :  { %v587_v35 = vsel %vm584_vm4, %v586_v34, %v582_v31 }
0x10a2   :  { %v590_v40 = vmul.f32 %v587_v35, %v536_v10 }
0x10a5   :  { %544 = vrot.lane.b32.xlu1 %v542_v13, %s1572_s17 }
0x10ff   :  { %v593_v52 = vpop.permute.xlu1 %592 }
0x1100   :  { %v595_v36 = vmul.f32 %v593_v52, %v587_v35 }
0x1102   :  { %597 = vrot.lane.b32.xlu2 %v595_v36, %s1575_s1 }
0x1107   :  { %v147_v37 = vpop.permute.xlu1 %146 }
0x1108   :  { %150 = vst.msk [vmem:[#allocation2] sm:$0x3] %vm149_vm6, %v147_v37 }
0x110a   :  { %224 = vrot.lane.b32.xlu2 %v1665_v59, %s1572_s17 }
0x110f   :  { %v353_v38 = vpop.permute.xlu1 %352 }
0x1110   :  { %355 = vst.msk [vmem:[#allocation2 + $0x6] sm:$0x3] %vm149_vm6, %v353_v38 }
0x1112   :  { %416 = vrot.lane.b32.xlu2 %v1692_v17, %s1572_s17  ;;  %v1341_v17 = vld [vmem:[%s1847_s4 + $0x8] sm:$0xff] }
0x1113   :  { %648 = vmatpush.bf16.msra.mxu0 %v1341_v17 }
0x1117   :  { %v545_v39 = vpop.permute.xlu1 %544 }
0x1118   :  { %547 = vst.msk [vmem:[#allocation2 + $0xc] sm:$0x3] %vm149_vm6, %v545_v39 }
0x115c   :  { %v598_v41 = vpop.permute.xlu2 %597 }
0x115d   :  { %v600_v42 = vadd.f32 %v598_v41, %v590_v40 }
0x115f   :  { %1419 = vtanh.f32 %v600_v42 }
0x1164   :  { %v225_v43 = vpop.permute.xlu2 %224 }
0x1165   :  { %v1420_v44 = vpop.eup %1419  ;;  %227 = vst.msk [vmem:[#allocation2 + $0x2] sm:$0x3] %vm149_vm6, %v225_v43 }
0x1166   :  { %603 = vrot.lane.b32.xlu0 %v1420_v44, %s1575_s1 }
0x116c   :  { %v417_v59 = vpop.permute.xlu2 %416 }
0x116d   :  { %419 = vst.msk [vmem:[#allocation2 + $0x8] sm:$0x3] %vm149_vm6, %v417_v59 }
0x116e   :  { %288 = vrot.lane.b32.xlu0 %v1674_v23, %s1572_s17  ;;  %v1340_v23 = vld [vmem:[%s1847_s4] sm:$0xff] }
0x116f   :  { %649 = vmatpush.bf16.msra.mxu0 %v1340_v23 }
0x1173   :  { %919 = vmatpush.bf16.msrb.mxu0 %v1343_v18 }
0x1176   :  { %480 = vrot.lane.b32.xlu0 %v1701_v47, %s1572_s17 }
0x1177   :  { %920 = vmatpush.bf16.msrb.mxu0 %v1342_v19 }
0x11d8   :  { %v604_v45 = vpop.permute.xlu0 %603 }
0x11d9   :  { %v606_v46 = vmul.f32 %v604_v45, %v587_v35 }
0x11db   :  { %608 = vrot.lane.b32.xlu2 %v606_v46, %s1572_s17 }
0x11e0   :  { %v289_v48 = vpop.permute.xlu0 %288 }
0x11e1   :  { %291 = vst.msk [vmem:[#allocation2 + $0x4] sm:$0x3] %vm149_vm6, %v289_v48 }
0x11e8   :  { %v481_v49 = vpop.permute.xlu0 %480  ;;  %v621_v50 = vld [vmem:[#allocation2] sm:$0xff] }
0x11e9   :  { %483 = vst.msk [vmem:[#allocation2 + $0xa] sm:$0x3] %vm149_vm6, %v481_v49 }
0x1235   :  { %v609_v47 = vpop.permute.xlu2 %608 }
0x1236   :  { %611 = vst.msk [vmem:[#allocation2 + $0xe] sm:$0x3] %vm149_vm6, %v609_v47 }
0x123d   :  { %v622_v51 = vld [vmem:[#allocation2 + $0x8] sm:$0xff] }
0x123e   :  { %v623_v53 = vpack.c.bf16 %v622_v51, %v621_v50 }
0x1240   :  { %1301 = vmatmul.msk.bf16.vlgmr.msra.gmra.mxu0 %vm168_vm5, %v623_v53 }
0x12bd   :  { %v651_v55 = vpop.f32.mrf.mxu0 }
0x12be   :  { %v652_v56 = vadd.f32 %v1355_v54, %v651_v55 }
0x12c0   :  { %656 = vst [vmem:[#allocation3] sm:$0xff] %v652_v56 }
0x12c5   :  { %v653_v57 = vpop.f32.mrf.mxu0 }
0x12c6   :  { %v654_v58 = vadd.f32 %v1355_v54, %v653_v57 }
0x12c7   :  { %v658_v60 = vld [vmem:[#allocation3] sm:$0x3]  ;;  %v701_v25 = vld [vmem:[#allocation3 + $0x2] sm:$0x3]  ;;  %v777_v47 = vld [vmem:[#allocation3 + $0x4] sm:$0x3] }
0x12c8   :  { %657 = vst [vmem:[#allocation3 + $0x8] sm:$0xff] %v654_v58  ;;  %1421 = vtanh.f32 %v658_v60  ;;  %v1302_v62 = vmul.f32 -1.442695, %v658_v60 }
0x12ca   :  { %1423 = vpow2.f32 %v1302_v62 }
0x12ce   :  { %v1422_v61 = vpop.eup %1421 }
0x12cf   :  { %681 = vrot.lane.b32.xlu0 %v1422_v61, %s1575_s1 }
0x12d0   :  { %v1424_v63 = vpop.eup %1423 }
0x12d1   :  { %v662_v0 = vadd.f32 1.0, %v1424_v63 }
0x12d3   :  { %1425 = vrcp.f32 %v662_v0  ;;  %v674_v6 = vand.u32 2147483648, %v662_v0  ;;  %vm668_vm8 = vweird.f32 %v662_v0  ;;  %v672_v7 = vand.u32 2147483647, %v662_v0 }
0x12d5   :  { %v675_v9 = vor.u32 1.1754944e-38, %v674_v6  ;;  %vm673_vm10 = vcmp.eq.f32.partialorder %v672_v7, 8.507059e+37 }
0x12d9   :  { %v1426_v1 = vpop.eup %1425 }
0x12da   :  { %v664_v2 = vmul.f32 %v1426_v1, %v662_v0  ;;  %vm669_vm7 = vweird.f32 %v1426_v1 }
0x12db   :  { %vm670_vm9 = vmor %vm668_vm8, %vm669_vm7 }
0x12dc   :  { %v665_v3 = vsub.f32 1.0, %v664_v2 }
0x12de   :  { %v666_v4 = vmul.f32 %v1426_v1, %v665_v3 }
0x12e0   :  { %v667_v5 = vadd.f32 %v1426_v1, %v666_v4 }
0x12e2   :  { %v671_v8 = vsel %vm670_vm9, %v1426_v1, %v667_v5 }
0x12e3   :  { %v676_v11 = vsel %vm673_vm10, %v675_v9, %v671_v8 }
0x12e4   :  { %v679_v13 = vmul.f32 0.0, %v676_v11 }
0x1341   :  { %v682_v10 = vpop.permute.xlu0 %681 }
0x1342   :  { %v684_v12 = vmul.f32 %v682_v10, %v676_v11 }
0x1344   :  { %686 = vrot.lane.b32.xlu1 %v684_v12, %s1575_s1 }
0x13b6   :  { %v687_v14 = vpop.permute.xlu1 %686 }
0x13b7   :  { %v689_v15 = vadd.f32 %v687_v14, %v679_v13 }
0x13b9   :  { %1427 = vtanh.f32 %v689_v15 }
0x13bf   :  { %v1428_v16 = vpop.eup %1427 }
0x13c0   :  { %692 = vrot.lane.b32.xlu2 %v1428_v16, %s1575_s1 }
0x141a   :  { %v693_v20 = vpop.permute.xlu2 %692 }
0x141b   :  { %v1750_v21 = vmul.f32 %v693_v20, %v676_v11 }
0x141d   :  { %v702_v22 = vpack.c.bf16 %v1750_v21, %v1750_v21 }
0x141f   :  { %704 = vrot.lane.b32.xlu0 %v702_v22, %s1572_s17 }
0x1491   :  { %v705_v24 = vpop.permute.xlu0 %704 }
0x1492   :  { %1311 = vmatmul.msk.bf16.vlgmr.msra.gmra.mxu1 %vm168_vm5, %v705_v24 }
0x150f   :  { %v730_v26 = vpop.f32.mrf.mxu1 }
0x1510   :  { %v734_v27 = vadd.f32 %v730_v26, %v701_v25 }
0x1512   :  { %1429 = vtanh.f32 %v734_v27  ;;  %v1312_v30 = vmul.f32 -1.442695, %v734_v27 }
0x1514   :  { %1431 = vpow2.f32 %v1312_v30 }
0x1517   :  { %v732_v28 = vpop.f32.mrf.mxu1 }
0x1518   :  { %v1430_v29 = vpop.eup %1429 }
0x1519   :  { %757 = vrot.lane.b32.xlu1 %v1430_v29, %s1575_s1 }
0x151a   :  { %v1432_v32 = vpop.eup %1431 }
0x151b   :  { %v738_v33 = vadd.f32 1.0, %v1432_v32 }
0x151d   :  { %1433 = vrcp.f32 %v738_v33  ;;  %v750_v37 = vand.u32 2147483648, %v738_v33  ;;  %vm744_vm12 = vweird.f32 %v738_v33  ;;  %v748_v38 = vand.u32 2147483647, %v738_v33 }
0x151f   :  { %v751_v40 = vor.u32 1.1754944e-38, %v750_v37  ;;  %vm749_vm14 = vcmp.eq.f32.partialorder %v748_v38, 8.507059e+37 }
0x1523   :  { %v1434_v31 = vpop.eup %1433 }
0x1524   :  { %v740_v34 = vmul.f32 %v1434_v31, %v738_v33  ;;  %vm745_vm11 = vweird.f32 %v1434_v31 }
0x1525   :  { %vm746_vm13 = vmor %vm744_vm12, %vm745_vm11 }
0x1526   :  { %v741_v52 = vsub.f32 1.0, %v740_v34 }
0x1528   :  { %v742_v35 = vmul.f32 %v1434_v31, %v741_v52 }
0x152a   :  { %v743_v36 = vadd.f32 %v1434_v31, %v742_v35 }
0x152c   :  { %v747_v39 = vsel %vm746_vm13, %v1434_v31, %v743_v36 }
0x152d   :  { %v752_v42 = vsel %vm749_vm14, %v751_v40, %v747_v39 }
0x152e   :  { %v755_v44 = vmul.f32 %v752_v42, %v689_v15  ;;  %v841_v15 = vld [vmem:[#allocation3 + $0x6] sm:$0x3] }
0x158b   :  { %v758_v41 = vpop.permute.xlu1 %757 }
0x158c   :  { %v760_v43 = vmul.f32 %v758_v41, %v752_v42 }
0x158e   :  { %762 = vrot.lane.b32.xlu2 %v760_v43, %s1575_s1 }
0x15e8   :  { %v763_v59 = vpop.permute.xlu2 %762 }
0x15e9   :  { %v765_v17 = vadd.f32 %v763_v59, %v755_v44  ;;  %v905_v59 = vld [vmem:[#allocation3 + $0x8] sm:$0x3] }
0x15eb   :  { %1435 = vtanh.f32 %v765_v17 }
0x15f1   :  { %v1436_v45 = vpop.eup %1435 }
0x15f2   :  { %768 = vrot.lane.b32.xlu0 %v1436_v45, %s1575_s1 }
0x1664   :  { %v769_v46 = vpop.permute.xlu0 %768 }
0x1665   :  { %v1759_v48 = vmul.f32 %v769_v46, %v752_v42 }
0x1667   :  { %v778_v49 = vpack.c.bf16 %v1759_v48, %v1759_v48 }
0x1669   :  { %780 = vrot.lane.b32.xlu1 %v778_v49, %s1572_s17 }
0x16db   :  { %v781_v23 = vpop.permute.xlu1 %780 }
0x16dc   :  { %1313 = vmatmul.msk.bf16.vlgmr.msra.gmra.mxu2 %vm168_vm5, %v781_v23 }
0x175f   :  { %v794_v50 = vpop.f32.mrf.mxu2 }
0x1760   :  { %v798_v51 = vadd.f32 %v794_v50, %v777_v47 }
0x1762   :  { %1437 = vtanh.f32 %v798_v51  ;;  %v1314_v55 = vmul.f32 -1.442695, %v798_v51 }
0x1764   :  { %1439 = vpow2.f32 %v1314_v55 }
0x1767   :  { %v796_v53 = vpop.f32.mrf.mxu2 }
0x1768   :  { %v1438_v54 = vpop.eup %1437 }
0x1769   :  { %821 = vrot.lane.b32.xlu2 %v1438_v54, %s1575_s1 }
0x176a   :  { %v1440_v56 = vpop.eup %1439 }
0x176b   :  { %v802_v57 = vadd.f32 1.0, %v1440_v56 }
0x176d   :  { %1441 = vrcp.f32 %v802_v57  ;;  %v814_v0 = vand.u32 2147483648, %v802_v57  ;;  %vm808_vm1 = vweird.f32 %v802_v57  ;;  %v812_v1 = vand.u32 2147483647, %v802_v57 }
0x176f   :  { %v815_v3 = vor.u32 1.1754944e-38, %v814_v0  ;;  %vm813_vm3 = vcmp.eq.f32.partialorder %v812_v1, 8.507059e+37 }
0x1773   :  { %v1442_v58 = vpop.eup %1441 }
0x1774   :  { %v804_v60 = vmul.f32 %v1442_v58, %v802_v57  ;;  %vm809_vm15 = vweird.f32 %v1442_v58 }
0x1775   :  { %vm810_vm2 = vmor %vm808_vm1, %vm809_vm15 }
0x1776   :  { %v805_v61 = vsub.f32 1.0, %v804_v60 }
0x1778   :  { %v806_v62 = vmul.f32 %v1442_v58, %v805_v61 }
0x177a   :  { %v807_v63 = vadd.f32 %v1442_v58, %v806_v62 }
0x177c   :  { %v811_v2 = vsel %vm810_vm2, %v1442_v58, %v807_v63 }
0x177d   :  { %v816_v5 = vsel %vm813_vm3, %v815_v3, %v811_v2 }
0x177e   :  { %v819_v7 = vmul.f32 %v816_v5, %v765_v17 }
0x17c3   :  { %v822_v4 = vpop.permute.xlu2 %821 }
0x17c4   :  { %v824_v6 = vmul.f32 %v822_v4, %v816_v5 }
0x17c6   :  { %826 = vrot.lane.b32.xlu0 %v824_v6, %s1575_s1 }
0x1838   :  { %v827_v8 = vpop.permute.xlu0 %826 }
0x1839   :  { %v829_v9 = vadd.f32 %v827_v8, %v819_v7 }
0x183b   :  { %1443 = vtanh.f32 %v829_v9 }
0x1841   :  { %v1444_v10 = vpop.eup %1443 }
0x1842   :  { %832 = vrot.lane.b32.xlu1 %v1444_v10, %s1575_s1 }
0x18b4   :  { %v833_v11 = vpop.permute.xlu1 %832 }
0x18b5   :  { %v1768_v12 = vmul.f32 %v833_v11, %v816_v5 }
0x18b7   :  { %v842_v13 = vpack.c.bf16 %v1768_v12, %v1768_v12 }
0x18b9   :  { %844 = vrot.lane.b32.xlu2 %v842_v13, %s1572_s17 }
0x1913   :  { %v845_v14 = vpop.permute.xlu2 %844 }
0x1914   :  { %1315 = vmatmul.msk.bf16.vlgmr.msra.gmra.mxu3 %vm168_vm5, %v845_v14 }
0x1997   :  { %v858_v16 = vpop.f32.mrf.mxu3 }
0x1998   :  { %v862_v18 = vadd.f32 %v858_v16, %v841_v15 }
0x199a   :  { %1445 = vtanh.f32 %v862_v18  ;;  %v1316_v22 = vmul.f32 -1.442695, %v862_v18 }
0x199c   :  { %1447 = vpow2.f32 %v1316_v22 }
0x199f   :  { %v860_v19 = vpop.f32.mrf.mxu3 }
0x19a0   :  { %v1446_v20 = vpop.eup %1445 }
0x19a1   :  { %885 = vrot.lane.b32.xlu0 %v1446_v20, %s1575_s1 }
0x19a2   :  { %v1448_v24 = vpop.eup %1447 }
0x19a3   :  { %v866_v25 = vadd.f32 1.0, %v1448_v24 }
0x19a5   :  { %1449 = vrcp.f32 %v866_v25  ;;  %v878_v32 = vand.u32 2147483648, %v866_v25  ;;  %vm872_vm7 = vweird.f32 %v866_v25  ;;  %v876_v33 = vand.u32 2147483647, %v866_v25 }
0x19a7   :  { %v879_v34 = vor.u32 1.1754944e-38, %v878_v32  ;;  %vm877_vm9 = vcmp.eq.f32.partialorder %v876_v33, 8.507059e+37 }
0x19ab   :  { %v1450_v26 = vpop.eup %1449 }
0x19ac   :  { %v868_v27 = vmul.f32 %v1450_v26, %v866_v25  ;;  %vm873_vm4 = vweird.f32 %v1450_v26 }
0x19ad   :  { %vm874_vm8 = vmor %vm872_vm7, %vm873_vm4 }
0x19ae   :  { %v869_v28 = vsub.f32 1.0, %v868_v27 }
0x19b0   :  { %v870_v29 = vmul.f32 %v1450_v26, %v869_v28 }
0x19b2   :  { %v871_v30 = vadd.f32 %v1450_v26, %v870_v29 }
0x19b4   :  { %v875_v31 = vsel %vm874_vm8, %v1450_v26, %v871_v30 }
0x19b5   :  { %v880_v35 = vsel %vm877_vm9, %v879_v34, %v875_v31 }
0x19b6   :  { %v883_v37 = vmul.f32 %v880_v35, %v829_v9  ;;  %v969_v9 = vld [vmem:[#allocation3 + $0xa] sm:$0x3] }
0x1a13   :  { %v886_v52 = vpop.permute.xlu0 %885 }
0x1a14   :  { %v888_v36 = vmul.f32 %v886_v52, %v880_v35 }
0x1a16   :  { %890 = vrot.lane.b32.xlu1 %v888_v36, %s1575_s1 }
0x1a88   :  { %v891_v38 = vpop.permute.xlu1 %890 }
0x1a89   :  { %v893_v39 = vadd.f32 %v891_v38, %v883_v37 }
0x1a8b   :  { %1451 = vtanh.f32 %v893_v39 }
0x1a91   :  { %v1452_v40 = vpop.eup %1451 }
0x1a92   :  { %896 = vrot.lane.b32.xlu2 %v1452_v40, %s1575_s1  ;;  %v1033_v40 = vld [vmem:[#allocation3 + $0xc] sm:$0x3] }
0x1aec   :  { %v897_v41 = vpop.permute.xlu2 %896 }
0x1aed   :  { %v1777_v42 = vmul.f32 %v897_v41, %v880_v35 }
0x1aef   :  { %v906_v43 = vpack.c.bf16 %v1777_v42, %v1777_v42 }
0x1af1   :  { %908 = vrot.lane.b32.xlu0 %v906_v43, %s1572_s17 }
0x1b63   :  { %v909_v44 = vpop.permute.xlu0 %908 }
0x1b64   :  { %1317 = vmatmul.msk.bf16.vlgmr.msrb.gmra.mxu0 %vm168_vm5, %v909_v44 }
0x1be1   :  { %v922_v17 = vpop.f32.mrf.mxu0 }
0x1be2   :  { %v926_v45 = vadd.f32 %v922_v17, %v905_v59 }
0x1be4   :  { %1453 = vtanh.f32 %v926_v45  ;;  %v1318_v23 = vmul.f32 -1.442695, %v926_v45 }
0x1be6   :  { %1455 = vpow2.f32 %v1318_v23 }
0x1be9   :  { %v924_v46 = vpop.f32.mrf.mxu0 }
0x1bea   :  { %v1454_v49 = vpop.eup %1453 }
0x1beb   :  { %949 = vrot.lane.b32.xlu1 %v1454_v49, %s1575_s1 }
0x1bec   :  { %v1456_v47 = vpop.eup %1455 }
0x1bed   :  { %v930_v50 = vadd.f32 1.0, %v1456_v47 }
0x1bef   :  { %1457 = vrcp.f32 %v930_v50  ;;  %v942_v57 = vand.u32 2147483648, %v930_v50  ;;  %vm936_vm11 = vweird.f32 %v930_v50  ;;  %v940_v58 = vand.u32 2147483647, %v930_v50 }
0x1bf1   :  { %v943_v61 = vor.u32 1.1754944e-38, %v942_v57  ;;  %vm941_vm13 = vcmp.eq.f32.partialorder %v940_v58, 8.507059e+37 }
0x1bf5   :  { %v1458_v51 = vpop.eup %1457 }
0x1bf6   :  { %v932_v53 = vmul.f32 %v1458_v51, %v930_v50  ;;  %vm937_vm10 = vweird.f32 %v1458_v51 }
0x1bf7   :  { %vm938_vm12 = vmor %vm936_vm11, %vm937_vm10 }
0x1bf8   :  { %v933_v54 = vsub.f32 1.0, %v932_v53 }
0x1bfa   :  { %v934_v55 = vmul.f32 %v1458_v51, %v933_v54 }
0x1bfc   :  { %v935_v56 = vadd.f32 %v1458_v51, %v934_v55 }
0x1bfe   :  { %v939_v60 = vsel %vm938_vm12, %v1458_v51, %v935_v56 }
0x1bff   :  { %v944_v63 = vsel %vm941_vm13, %v943_v61, %v939_v60 }
0x1c00   :  { %v947_v1 = vmul.f32 %v944_v63, %v893_v39 }
0x1c5d   :  { %v950_v62 = vpop.permute.xlu1 %949 }
0x1c5e   :  { %v952_v0 = vmul.f32 %v950_v62, %v944_v63 }
0x1c60   :  { %954 = vrot.lane.b32.xlu2 %v952_v0, %s1575_s1 }
0x1cba   :  { %v955_v2 = vpop.permute.xlu2 %954 }
0x1cbb   :  { %v957_v3 = vadd.f32 %v955_v2, %v947_v1 }
0x1cbd   :  { %1459 = vtanh.f32 %v957_v3 }
0x1cc3   :  { %v1460_v4 = vpop.eup %1459 }
0x1cc4   :  { %960 = vrot.lane.b32.xlu0 %v1460_v4, %s1575_s1 }
0x1d36   :  { %v961_v5 = vpop.permute.xlu0 %960 }
0x1d37   :  { %v1786_v6 = vmul.f32 %v961_v5, %v944_v63  ;;  %v1097_v5 = vld [vmem:[#allocation3 + $0xe] sm:$0x3] }
0x1d39   :  { %v970_v7 = vpack.c.bf16 %v1786_v6, %v1786_v6 }
0x1d3b   :  { %972 = vrot.lane.b32.xlu1 %v970_v7, %s1572_s17 }
0x1dad   :  { %v973_v8 = vpop.permute.xlu1 %972 }
0x1dae   :  { %1319 = vmatmul.msk.bf16.vlgmr.msrb.gmra.mxu1 %vm168_vm5, %v973_v8 }
0x1e2b   :  { %v986_v10 = vpop.f32.mrf.mxu1 }
0x1e2c   :  { %v990_v11 = vadd.f32 %v986_v10, %v969_v9 }
0x1e2e   :  { %1461 = vtanh.f32 %v990_v11  ;;  %v1320_v15 = vmul.f32 -1.442695, %v990_v11 }
0x1e30   :  { %1463 = vpow2.f32 %v1320_v15 }
0x1e33   :  { %v988_v13 = vpop.f32.mrf.mxu1 }
0x1e34   :  { %v1462_v14 = vpop.eup %1461 }
0x1e35   :  { %1013 = vrot.lane.b32.xlu2 %v1462_v14, %s1575_s1 }
0x1e36   :  { %v1464_v16 = vpop.eup %1463 }
0x1e37   :  { %v994_v18 = vadd.f32 1.0, %v1464_v16 }
0x1e39   :  { %1465 = vrcp.f32 %v994_v18  ;;  %v1006_v26 = vand.u32 2147483648, %v994_v18  ;;  %vm1000_vm15 = vweird.f32 %v994_v18  ;;  %v1004_v27 = vand.u32 2147483647, %v994_v18 }
0x1e3b   :  { %v1007_v29 = vor.u32 1.1754944e-38, %v1006_v26  ;;  %vm1005_vm2 = vcmp.eq.f32.partialorder %v1004_v27, 8.507059e+37 }
0x1e3f   :  { %v1466_v19 = vpop.eup %1465 }
0x1e40   :  { %v996_v20 = vmul.f32 %v1466_v19, %v994_v18  ;;  %vm1001_vm14 = vweird.f32 %v1466_v19 }
0x1e41   :  { %vm1002_vm1 = vmor %vm1000_vm15, %vm1001_vm14 }
0x1e42   :  { %v997_v22 = vsub.f32 1.0, %v996_v20 }
0x1e44   :  { %v998_v24 = vmul.f32 %v1466_v19, %v997_v22 }
0x1e46   :  { %v999_v25 = vadd.f32 %v1466_v19, %v998_v24 }
0x1e48   :  { %v1003_v28 = vsel %vm1002_vm1, %v1466_v19, %v999_v25 }
0x1e49   :  { %v1008_v32 = vsel %vm1005_vm2, %v1007_v29, %v1003_v28 }
0x1e4a   :  { %v1011_v31 = vmul.f32 %v1008_v32, %v957_v3 }
0x1e8f   :  { %v1014_v30 = vpop.permute.xlu2 %1013 }
0x1e90   :  { %v1016_v33 = vmul.f32 %v1014_v30, %v1008_v32 }
0x1e92   :  { %1018 = vrot.lane.b32.xlu0 %v1016_v33, %s1575_s1 }
0x1f04   :  { %v1019_v34 = vpop.permute.xlu0 %1018 }
0x1f05   :  { %v1021_v52 = vadd.f32 %v1019_v34, %v1011_v31 }
0x1f07   :  { %1467 = vtanh.f32 %v1021_v52 }
0x1f0d   :  { %v1468_v35 = vpop.eup %1467 }
0x1f0e   :  { %1024 = vrot.lane.b32.xlu1 %v1468_v35, %s1575_s1 }
0x1f80   :  { %v1025_v36 = vpop.permute.xlu1 %1024 }
0x1f81   :  { %v1795_v37 = vmul.f32 %v1025_v36, %v1008_v32 }
0x1f83   :  { %v1034_v38 = vpack.c.bf16 %v1795_v37, %v1795_v37 }
0x1f85   :  { %1036 = vrot.lane.b32.xlu2 %v1034_v38, %s1572_s17 }
0x1fdf   :  { %v1037_v39 = vpop.permute.xlu2 %1036 }
0x1fe0   :  { %1321 = vmatmul.msk.bf16.vlgmr.msrb.gmra.mxu2 %vm168_vm5, %v1037_v39 }
0x2063   :  { %v1050_v41 = vpop.f32.mrf.mxu2 }
0x2064   :  { %v1054_v43 = vadd.f32 %v1050_v41, %v1033_v40 }
0x2066   :  { %1469 = vtanh.f32 %v1054_v43  ;;  %v1322_v17 = vmul.f32 -1.442695, %v1054_v43 }
0x2068   :  { %1471 = vpow2.f32 %v1322_v17 }
0x206b   :  { %v1052_v44 = vpop.f32.mrf.mxu2 }
0x206c   :  { %v1470_v59 = vpop.eup %1469  ;;  %v1356_v44 = vld [vmem:[#allocation7] ss:$0 sm:$0xff] }
0x206d   :  { %1077 = vrot.lane.b32.xlu0 %v1470_v59, %s1575_s1 }
0x206e   :  { %v1472_v45 = vpop.eup %1471 }
0x206f   :  { %v1058_v46 = vadd.f32 1.0, %v1472_v45 }
0x2071   :  { %1473 = vrcp.f32 %v1058_v46  ;;  %v1070_v53 = vand.u32 2147483648, %v1058_v46  ;;  %vm1064_vm4 = vweird.f32 %v1058_v46  ;;  %v1068_v54 = vand.u32 2147483647, %v1058_v46 }
0x2073   :  { %v1071_v56 = vor.u32 1.1754944e-38, %v1070_v53  ;;  %vm1069_vm8 = vcmp.eq.f32.partialorder %v1068_v54, 8.507059e+37 }
0x2077   :  { %v1474_v49 = vpop.eup %1473 }
0x2078   :  { %v1060_v23 = vmul.f32 %v1474_v49, %v1058_v46  ;;  %vm1065_vm3 = vweird.f32 %v1474_v49 }
0x2079   :  { %vm1066_vm7 = vmor %vm1064_vm4, %vm1065_vm3 }
0x207a   :  { %v1061_v47 = vsub.f32 1.0, %v1060_v23 }
0x207c   :  { %v1062_v50 = vmul.f32 %v1474_v49, %v1061_v47 }
0x207e   :  { %v1063_v51 = vadd.f32 %v1474_v49, %v1062_v50 }
0x2080   :  { %v1067_v55 = vsel %vm1066_vm7, %v1474_v49, %v1063_v51 }
0x2081   :  { %v1072_v58 = vsel %vm1069_vm8, %v1071_v56, %v1067_v55 }
0x2082   :  { %v1075_v61 = vmul.f32 %v1072_v58, %v1021_v52 }
0x20df   :  { %v1078_v57 = vpop.permute.xlu0 %1077 }
0x20e0   :  { %v1080_v60 = vmul.f32 %v1078_v57, %v1072_v58 }
0x20e2   :  { %1082 = vrot.lane.b32.xlu1 %v1080_v60, %s1575_s1 }
0x2154   :  { %v1083_v62 = vpop.permute.xlu1 %1082 }
0x2155   :  { %v1085_v63 = vadd.f32 %v1083_v62, %v1075_v61 }
0x2157   :  { %1475 = vtanh.f32 %v1085_v63 }
0x215d   :  { %v1476_v0 = vpop.eup %1475 }
0x215e   :  { %1088 = vrot.lane.b32.xlu2 %v1476_v0, %s1575_s1 }
0x21b8   :  { %v1089_v1 = vpop.permute.xlu2 %1088 }
0x21b9   :  { %v1091_v2 = vmul.f32 %v1089_v1, %v1072_v58 }
0x21bb   :  { %v1098_v3 = vpack.c.bf16 %v1091_v2, %v1091_v2 }
0x21bd   :  { %1100 = vrot.lane.b32.xlu0 %v1098_v3, %s1572_s17 }
0x222f   :  { %v1101_v4 = vpop.permute.xlu0 %1100 }
0x2230   :  { %1323 = vmatmul.msk.bf16.vlgmr.msrb.gmra.mxu3 %vm168_vm5, %v1101_v4 }
0x22b3   :  { %v1114_v7 = vpop.f32.mrf.mxu3 }
0x22b4   :  { %v1118_v8 = vadd.f32 %v1114_v7, %v1097_v5 }
0x22b6   :  { %1477 = vtanh.f32 %v1118_v8  ;;  %v1324_v11 = vmul.f32 -1.442695, %v1118_v8 }
0x22b8   :  { %1479 = vpow2.f32 %v1324_v11 }
0x22bb   :  { %v1116_v9 = vpop.f32.mrf.mxu3 }
0x22bc   :  { %v1478_v10 = vpop.eup %1477 }
0x22bd   :  { %1141 = vrot.lane.b32.xlu1 %v1478_v10, %s1575_s1 }
0x22be   :  { %v1480_v13 = vpop.eup %1479 }
0x22bf   :  { %v1122_v14 = vadd.f32 1.0, %v1480_v13 }
0x22c1   :  { %1481 = vrcp.f32 %v1122_v14  ;;  %v1134_v22 = vand.u32 2147483648, %v1122_v14  ;;  %vm1128_vm10 = vweird.f32 %v1122_v14  ;;  %v1132_v24 = vand.u32 2147483647, %v1122_v14 }
0x22c3   :  { %v1135_v25 = vor.u32 1.1754944e-38, %v1134_v22  ;;  %vm1133_vm12 = vcmp.eq.f32.partialorder %v1132_v24, 8.507059e+37 }
0x22c5   :  { %697 = vrot.lane.b32.xlu1 %v1750_v21, %s1572_s17 }
0x22c7   :  { %v1482_v15 = vpop.eup %1481 }
0x22c8   :  { %v1124_v16 = vmul.f32 %v1482_v15, %v1122_v14  ;;  %vm1129_vm9 = vweird.f32 %v1482_v15 }
0x22c9   :  { %vm1130_vm11 = vmor %vm1128_vm10, %vm1129_vm9 }
0x22ca   :  { %v1125_v18 = vsub.f32 1.0, %v1124_v16 }
0x22cc   :  { %v1126_v19 = vmul.f32 %v1482_v15, %v1125_v18 }
0x22cd   :  { %901 = vrot.lane.b32.xlu1 %v1777_v42, %s1572_s17 }
0x22ce   :  { %v1127_v20 = vadd.f32 %v1482_v15, %v1126_v19 }
0x22d0   :  { %v1131_v21 = vsel %vm1130_vm11, %v1482_v15, %v1127_v20 }
0x22d1   :  { %v1136_v26 = vsel %vm1133_vm12, %v1135_v25, %v1131_v21 }
0x22d2   :  { %v1139_v32 = vmul.f32 %v1136_v26, %v1085_v63 }
0x22d5   :  { %1093 = vrot.lane.b32.xlu1 %v1091_v2, %s1572_s17 }
0x232f   :  { %v1142_v42 = vpop.permute.xlu1 %1141 }
0x2330   :  { %v1144_v27 = vmul.f32 %v1142_v42, %v1136_v26 }
0x2332   :  { %1146 = vrot.lane.b32.xlu2 %v1144_v27, %s1575_s1 }
0x2337   :  { %v698_v28 = vpop.permute.xlu1 %697 }
0x2338   :  { %700 = vst.msk [vmem:[#allocation2] sm:$0x3] %vm149_vm6, %v698_v28 }
0x233a   :  { %773 = vrot.lane.b32.xlu2 %v1759_v48, %s1572_s17 }
0x233f   :  { %v902_v29 = vpop.permute.xlu1 %901 }
0x2340   :  { %904 = vst.msk [vmem:[#allocation2 + $0x6] sm:$0x3] %vm149_vm6, %v902_v29 }
0x2342   :  { %965 = vrot.lane.b32.xlu2 %v1786_v6, %s1572_s17  ;;  %v1345_v6 = vld [vmem:[%s1850_s7 + $0x8] sm:$0xff] }
0x2343   :  { %1193 = vmatpush.bf16.msra.mxu0 %v1345_v6 }
0x2347   :  { %v1094_v30 = vpop.permute.xlu1 %1093 }
0x2348   :  { %1096 = vst.msk [vmem:[#allocation2 + $0xc] sm:$0x3] %vm149_vm6, %v1094_v30 }
0x238c   :  { %v1147_v33 = vpop.permute.xlu2 %1146 }
0x238d   :  { %v1149_v31 = vadd.f32 %v1147_v33, %v1139_v32 }
0x238f   :  { %1483 = vtanh.f32 %v1149_v31 }
0x2394   :  { %v774_v34 = vpop.permute.xlu2 %773 }
0x2395   :  { %v1484_v52 = vpop.eup %1483  ;;  %776 = vst.msk [vmem:[#allocation2 + $0x2] sm:$0x3] %vm149_vm6, %v774_v34 }
0x2396   :  { %1152 = vrot.lane.b32.xlu0 %v1484_v52, %s1575_s1 }
0x239c   :  { %v966_v48 = vpop.permute.xlu2 %965 }
0x239d   :  { %968 = vst.msk [vmem:[#allocation2 + $0x8] sm:$0x3] %vm149_vm6, %v966_v48 }
0x239e   :  { %837 = vrot.lane.b32.xlu0 %v1768_v12, %s1572_s17  ;;  %v1344_v12 = vld [vmem:[%s1850_s7] sm:$0xff]  ;;  %s1576_s7 = smov [#allocation9]  }
0x239f   :  { %1194 = vmatpush.bf16.msra.mxu0 %v1344_v12  ;;  %s1245_s13 = sshll.u32 %s1576_s7, 4  ;;  %s1246_s13 = int_to_ptr.vmem [resolvable:$true] %s1245_s13 }
0x23a6   :  { %1029 = vrot.lane.b32.xlu0 %v1795_v37, %s1572_s17 }
0x2408   :  { %v1153_v35 = vpop.permute.xlu0 %1152 }
0x2409   :  { %v1155_v36 = vmul.f32 %v1153_v35, %v1136_v26 }
0x240b   :  { %1157 = vrot.lane.b32.xlu2 %v1155_v36, %s1572_s17  ;;  %s1577_s17 = smov 128  }
0x2410   :  { %v838_v38 = vpop.permute.xlu0 %837 }
0x2411   :  { %840 = vst.msk [vmem:[#allocation2 + $0x4] sm:$0x3] %vm149_vm6, %v838_v38 }
0x2418   :  { %v1030_v39 = vpop.permute.xlu0 %1029  ;;  %v1161_v40 = vld [vmem:[#allocation2] sm:$0xff] }
0x2419   :  { %1032 = vst.msk [vmem:[#allocation2 + $0xa] sm:$0x3] %vm149_vm6, %v1030_v39 }
0x2465   :  { %v1158_v37 = vpop.permute.xlu2 %1157 }
0x2466   :  { %1160 = vst.msk [vmem:[#allocation2 + $0xe] sm:$0x3] %vm149_vm6, %v1158_v37 }
0x246d   :  { %v1162_v41 = vld [vmem:[#allocation2 + $0x8] sm:$0xff] }
0x246e   :  { %v1163_v43 = vpack.c.bf16 %v1162_v41, %v1161_v40 }
0x2470   :  { %1333 = vmatmul.msk.bf16.vlgmr.msra.gmra.mxu0 %vm168_vm5, %v1163_v43 }
0x24ed   :  { %v1196_v59 = vpop.f32.mrf.mxu0 }
0x24ee   :  { %v1197_v17 = vadd.f32 %v1356_v44, %v1196_v59 }
0x24f0   :  { %v1334_v45 = vmul.f32 -1.442695, %v1197_v17 }
0x24f2   :  { %1485 = vpow2.f32 %v1334_v45 }
0x24f5   :  { %v1198_v46 = vpop.f32.mrf.mxu0 }
0x24f6   :  { %v1199_v49 = vadd.f32 %v1356_v44, %v1198_v46 }
0x24f8   :  { %v1486_v23 = vpop.eup %1485  ;;  %v1335_v47 = vmul.f32 -1.442695, %v1199_v49 }
0x24f9   :  { %v1207_v50 = vadd.f32 1.0, %v1486_v23 }
0x24fa   :  { %1487 = vpow2.f32 %v1335_v47 }
0x24fb   :  { %1489 = vrcp.f32 %v1207_v50  ;;  %v1220_v57 = vand.u32 2147483648, %v1207_v50  ;;  %v1218_v60 = vand.u32 2147483647, %v1207_v50  ;;  %vm1214_vm6 = vweird.f32 %v1207_v50 }
0x24fd   :  { %v1221_v63 = vor.u32 1.1754944e-38, %v1220_v57  ;;  %vm1219_vm14 = vcmp.eq.f32.partialorder %v1218_v60, 8.507059e+37 }
0x2500   :  { %v1488_v51 = vpop.eup %1487 }
0x2501   :  { %v1490_v53 = vpop.eup %1489  ;;  %v1208_v54 = vadd.f32 1.0, %v1488_v51 }
0x2502   :  { %v1210_v55 = vmul.f32 %v1490_v53, %v1207_v50  ;;  %vm1215_vm5 = vweird.f32 %v1490_v53 }
0x2503   :  { %1491 = vrcp.f32 %v1208_v54  ;;  %vm1216_vm13 = vmor %vm1214_vm6, %vm1215_vm5  ;;  %v1235_v4 = vand.u32 2147483648, %v1208_v54  ;;  %v1233_v7 = vand.u32 2147483647, %v1208_v54  ;;  %vm1229_vm1 = vweird.f32 %v1208_v54 }
0x2504   :  { %v1211_v56 = vsub.f32 1.0, %v1210_v55 }
0x2505   :  { %v1236_v9 = vor.u32 1.1754944e-38, %v1235_v4  ;;  %vm1234_vm3 = vcmp.eq.f32.partialorder %v1233_v7, 8.507059e+37 }
0x2506   :  { %v1212_v58 = vmul.f32 %v1490_v53, %v1211_v56 }
0x2508   :  { %v1213_v61 = vadd.f32 %v1490_v53, %v1212_v58 }
0x2509   :  { %v1492_v62 = vpop.eup %1491 }
0x250a   :  { %v1225_v0 = vmul.f32 %v1492_v62, %v1208_v54  ;;  %v1217_v1 = vsel %vm1216_vm13, %v1490_v53, %v1213_v61  ;;  %vm1230_vm15 = vweird.f32 %v1492_v62 }
0x250b   :  { %v1222_v2 = vsel %vm1219_vm14, %v1221_v63, %v1217_v1  ;;  %vm1231_vm2 = vmor %vm1229_vm1, %vm1230_vm15 }
0x250c   :  { %v1226_v3 = vsub.f32 1.0, %v1225_v0  ;;  %1239 = vst.msk [vmem:[#allocation9] sm:$0xff] %vm87_vm0, %v1222_v2 }
0x250e   :  { %v1227_v5 = vmul.f32 %v1492_v62, %v1226_v3 }
0x2510   :  { %v1228_v8 = vadd.f32 %v1492_v62, %v1227_v5 }
0x2512   :  { %v1232_v10 = vsel %vm1231_vm2, %v1492_v62, %v1228_v8 }
0x2513   :  { %v1237_v11 = vsel %vm1234_vm3, %v1236_v9, %v1232_v10 }
0x2514   :  { %1240 = vst.msk [vmem:[#allocation9 + $0x8] sm:$0xff] %vm87_vm0, %v1237_v11 }
0x2515   :  { %1253 = dma.vmem_to_hbm [thread:$0]  %s1246_s13, 256, %s1248_s16, [#allocation6], %s1577_s17, %s1577_s17, %s1578_s18  }
0x2516   :  { %1569 = dma.done.wait [#allocation6], 256  }
0x2517   :  { %1570 = vsyncadd [#allocation6], 4294967040 }
0x2518   :  { %1258 = vsyncpa [#allocation5], 1 }
0x2519   :  { %1259 = vsyncpa [#allocation8], 1 }
0x251a   :  { %1260 = vsyncpa [#allocation6], 1 }

</bundles_post_ra>
